<compile_context>
chip_gen: v7x
topology: tpu7x:2x2x1
jax: 0.10.0
libtpu: 0.0.40
codegen_flags: <defaults>
</compile_context>

<pallas_src>
import jax
import jax.numpy as jnp
from jax.experimental import pallas as pl
from jax.experimental.pallas import tpu as pltpu


# ----------------------------------------------------------------------------
# helpers
# ----------------------------------------------------------------------------
def _round_up(x, m):
    return ((x + m - 1) // m) * m


def _pad2d(a, rows, cols):
    r, c = a.shape
    return jnp.pad(a, ((0, rows - r), (0, cols - c)))


def _vmem_capacity_bytes():
    try:
        cap = int(getattr(pltpu.get_tpu_info(), "vmem_capacity_bytes", 0))
        if cap > 0:
            return cap
    except Exception:
        pass
    return 64 * 1024 * 1024  # conservative fallback (v7x); v5e/v6e have 128 MiB


def _choose_tm(batch, sublane, block_m):
    """Sublane-aligned batch tile minimizing tail padding; prefers large tiles."""
    block_m = max(sublane, (block_m // sublane) * sublane)
    if batch <= block_m:
        return _round_up(batch, sublane)
    cands = [c for c in (1024, 768, 512, 384, 256, 128)
             if sublane <= c <= block_m and c % sublane == 0]
    if not cands:
        cands = [block_m]
    # minimize padded rows; tie-break toward the larger tile (amortizes ~0.35us/step).
    return min(cands, key=lambda c: (_round_up(batch, c) - batch, -c))


# ----------------------------------------------------------------------------
# Fused kernel: x tile -> encoder hiddens (ReLU) -> latent (emit z)
#                       -> decoder hiddens (ReLU) -> output (emit x_hat)
# All layers unrolled statically; weights/biases are whole-array VMEM-resident refs.
# ----------------------------------------------------------------------------
def _make_fused_kernel(num_layers, relu_flags, z_layer_idx):
    def kernel(*refs):
        x_ref = refs[0]
        wb = refs[1:1 + 2 * num_layers]
        xhat_ref = refs[1 + 2 * num_layers]
        z_ref = refs[2 + 2 * num_layers]

        h = x_ref[...]
        for li in range(num_layers):                       # static, unrolled
            w = wb[2 * li][...]
            b = wb[2 * li + 1][...]                        # already f32 (pre-cast)
            # MXU matmul with f32 accumulation; bias + ReLU stay f32 on the VPU.
            y = jnp.dot(h.astype(w.dtype), w, preferred_element_type=jnp.float32)
            y = y + b                                      # (1, N) broadcasts over rows
            if relu_flags[li]:
                y = jnp.maximum(y, 0.0)
            if li == z_layer_idx:
                z_ref[...] = y.astype(z_ref.dtype)         # encoder latent output
            h = y
        xhat_ref[...] = h.astype(xhat_ref.dtype)

    return kernel


# ----------------------------------------------------------------------------
# One-time parameter preparation (hoisted out of the forward hot path)
# ----------------------------------------------------------------------------
def prepare_params(params, compute_dtype=jnp.bfloat16):
    enc, dec = params["enc"], params["dec"]
    layers = list(enc) + list(dec)
    num_layers = len(layers)
    n_enc = len(enc)
    z_layer_idx = n_enc - 1
    # ReLU after every hidden layer; none after latent_map / output_map (matches torch).
    relu_flags = tuple(i != z_layer_idx and i != num_layers - 1
                       for i in range(num_layers))

    input_dim = layers[0][0].shape[0]
    latent_dim = enc[-1][0].shape[1]
    output_dim = layers[-1][0].shape[1]

    d_in_p = _round_up(input_dim, 128)
    flat_wb, out_dims_p = [], []
    in_p = d_in_p
    for (w, b) in layers:
        n_p = _round_up(w.shape[1], 128)
        w_p = _pad2d(w.astype(compute_dtype), in_p, n_p)
        b_p = _pad2d(jnp.reshape(b, (1, -1)).astype(jnp.float32), 1, n_p)
        flat_wb.extend((w_p, b_p))
        out_dims_p.append(n_p)
        in_p = n_p

    return dict(
        flat_wb=flat_wb,
        num_layers=num_layers,
        relu_flags=relu_flags,
        z_layer_idx=z_layer_idx,
        input_dim=input_dim, d_in_p=d_in_p,
        latent_dim=latent_dim, latent_p=out_dims_p[z_layer_idx],
        output_dim=output_dim, dout_p=out_dims_p[-1],
        out_dims_p=tuple(out_dims_p),
        compute_dtype=jnp.dtype(compute_dtype),
    )


# ----------------------------------------------------------------------------
# Forward: padding, BlockSpecs, grid over batch, cost/VMEM hints
# ----------------------------------------------------------------------------
def mlp_autoencoder_forward(prepared, x, *, block_m=512):
    batch, input_dim = x.shape
    assert input_dim == prepared["input_dim"], "input feature dim mismatch"

    cdtype = prepared["compute_dtype"]
    out_dtype = x.dtype
    flat_wb = prepared["flat_wb"]
    num_layers = prepared["num_layers"]
    d_in_p = prepared["d_in_p"]
    dout_p = prepared["dout_p"]
    latent_p = prepared["latent_p"]
    out_dims_p = prepared["out_dims_p"]

    # ---- batch tiling: sublane-aligned, minimal tail padding, megacore-friendly ----
    sublane = 16 if jnp.dtype(cdtype).itemsize < 4 else 8
    tm = _choose_tm(batch, sublane, block_m)
    m_pad = _round_up(batch, tm)
    grid = (m_pad // tm,)

    # ---- input cast/pad (padding elided when already aligned) ----
    x_c = x.astype(cdtype)
    if (m_pad, d_in_p) != (batch, input_dim):
        x_p = jnp.pad(x_c, ((0, m_pad - batch), (0, d_in_p - input_dim)))
    else:
        x_p = x_c

    # ---- scheduling hints ----
    act_bpe = jnp.dtype(cdtype).itemsize
    out_bpe = jnp.dtype(out_dtype).itemsize
    wb_bytes = sum(a.size * a.dtype.itemsize for a in flat_wb)
    w_list = flat_wb[0::2]
    flops = 2 * m_pad * sum(w.shape[0] * w.shape[1] for w in w_list)
    bytes_accessed = (m_pad * d_in_p * act_bpe + wb_bytes
                      + m_pad * (dout_p + latent_p) * out_bpe)
    cost = pl.CostEstimate(flops=flops, transcendentals=0,
                           bytes_accessed=bytes_accessed)

    # VMEM budget: resident weights (worst case double-buffered) + double-buffered
    # activation tiles + f32 inter-layer intermediates headroom; per-generation cap.
    cap = _vmem_capacity_bytes()
    needed = (2 * wb_bytes
              + 2 * tm * d_in_p * act_bpe
              + 2 * tm * (dout_p + latent_p) * out_bpe
              + 4 * tm * 4 * max(out_dims_p))
    vmem_limit = int(min(0.9 * cap, max(needed + (8 << 20), 0.75 * cap)))
    # TODO(synk): K/N-tiled fallback (pltpu.emit_pipeline in the body) for weight sets
    # too large for whole-weight VMEM residency (e.g. hidden dims >= 2048 on v7x).

    kernel = _make_fused_kernel(num_layers, prepared["relu_flags"],
                                prepared["z_layer_idx"])
    out_shape = (
        jax.ShapeDtypeStruct((m_pad, dout_p), out_dtype),
        jax.ShapeDtypeStruct((m_pad, latent_p), out_dtype),
    )
    out_specs = (
        pl.BlockSpec((tm, dout_p), lambda i: (i, 0)),
        pl.BlockSpec((tm, latent_p), lambda i: (i, 0)),
    )
    compiler_params = pltpu.CompilerParams(
        dimension_semantics=("parallel",),     # batch tiles shard across TCs (v7x)
        vmem_limit_bytes=vmem_limit,
    )

    def run(single_buffer_weights):
        in_specs = [pl.BlockSpec((tm, d_in_p), lambda i: (i, 0))]
        for a in flat_wb:
            if single_buffer_weights:
                # Constant index_map -> resident in VMEM; single-buffer to halve its cost.
                spec = pl.BlockSpec(a.shape, lambda i: (0, 0),
                                    pipeline_mode=pl.Buffered(1))
            else:
                spec = pl.BlockSpec(a.shape, lambda i: (0, 0))
            in_specs.append(spec)
        return pl.pallas_call(
            kernel,
            out_shape=out_shape,
            grid=grid,
            in_specs=in_specs,
            out_specs=out_specs,
            compiler_params=compiler_params,
            cost_estimate=cost,
        )(x_p, *flat_wb)

    try:
        x_hat_p, z_p = run(single_buffer_weights=True)
    except Exception:
        # Stricter/older JAX: fall back to default double-buffered BlockSpecs.
        x_hat_p, z_p = run(single_buffer_weights=False)

    output_dim = prepared["output_dim"]
    latent_dim = prepared["latent_dim"]
    x_hat = (x_hat_p if (m_pad, dout_p) == (batch, output_dim)
             else x_hat_p[:batch, :output_dim])
    z = (z_p if (m_pad, latent_p) == (batch, latent_dim)
         else z_p[:batch, :latent_dim])
    return x_hat, z


# ----------------------------------------------------------------------------
# Deterministic parameter init (mimics nn.Linear's U(-1/sqrt(fan_in), +1/sqrt(fan_in)))
# ----------------------------------------------------------------------------
def _init_linear(key, in_dim, out_dim, dtype=jnp.float32):
    kw, kb = jax.random.split(key)
    bound = 1.0 / jnp.sqrt(jnp.asarray(in_dim, dtype))
    w = jax.random.uniform(kw, (in_dim, out_dim), dtype, -bound, bound)
    b = jax.random.uniform(kb, (out_dim,), dtype, -bound, bound)
    return w, b


def init_autoencoder_params(key, input_dim, hidden_dims, latent_dim):
    params = {"enc": [], "dec": []}
    keys = jax.random.split(key, 2 * (len(hidden_dims) + 1))
    ki = 0
    dims = [input_dim] + list(hidden_dims) + [latent_dim]
    for i in range(len(dims) - 1):
        params["enc"].append(_init_linear(keys[ki], dims[i], dims[i + 1]))
        ki += 1
    rdims = [latent_dim] + list(hidden_dims[::-1]) + [input_dim]
    for i in range(len(rdims) - 1):
        params["dec"].append(_init_linear(keys[ki], rdims[i], rdims[i + 1]))
        ki += 1
    return params


# Pure-JAX reference (matches MLPAutoEncoder.forward -> (x_hat, z)).
def _reference_forward(params, x):
    h = x
    for (w, b) in params["enc"][:-1]:
        h = jnp.maximum(h @ w + b, 0.0)
    w, b = params["enc"][-1]
    z = h @ w + b
    h = z
    for (w, b) in params["dec"][:-1]:
        h = jnp.maximum(h @ w + b, 0.0)
    w, b = params["dec"][-1]
    return h @ w + b, z


if __name__ == "__main__":
    # Small, module-consistent shapes; deliberately non-aligned to exercise padding.
    batch = 16
    input_dim = 20
    hidden_dims = [64, 32]
    latent_dim = 5

    key = jax.random.PRNGKey(0)
    kparam, kx = jax.random.split(key)
    params = init_autoencoder_params(kparam, input_dim, hidden_dims, latent_dim)
    x = jax.random.normal(kx, (batch, input_dim), jnp.float32)

    x_hat_ref, z_ref = _reference_forward(params, x)

    # f32 path: strict correctness check against the pure-JAX reference.
    prep_f32 = prepare_params(params, compute_dtype=jnp.float32)
    x_hat32, z32 = mlp_autoencoder_forward(prep_f32, x)
    jax.block_until_ready(x_hat32)
    jax.block_until_ready(z32)
    assert x_hat32.shape == (batch, input_dim) and z32.shape == (batch, latent_dim)
    assert jnp.allclose(x_hat32, x_hat_ref, atol=1e-4, rtol=1e-4)
    assert jnp.allclose(z32, z_ref, atol=1e-4, rtol=1e-4)

    # bf16 path (default perf dtype): loose check — expected rounding, not a kernel bug.
    prep_bf16 = prepare_params(params)                    # compute_dtype=jnp.bfloat16
    x_hat, z = mlp_autoencoder_forward(prep_bf16, x)
    jax.block_until_ready(x_hat)
    jax.block_until_ready(z)
    assert x_hat.shape == (batch, input_dim) and z.shape == (batch, latent_dim)
    assert jnp.allclose(x_hat, x_hat_ref, atol=1e-1, rtol=1e-1)
    assert jnp.allclose(z, z_ref, atol=1e-1, rtol=1e-1)

    print("KERNEL_OK")
</pallas_src>

<mosaic_0001>
module attributes {stable_mosaic.version = 11 : i64} {
  func.func @kernel(%arg0: i32, %arg1: memref<16x128xf32, #tpu.memory_space<vmem>>, %arg2: memref<128x128xf32, #tpu.memory_space<vmem>>, %arg3: memref<1x128xf32, #tpu.memory_space<vmem>>, %arg4: memref<128x128xf32, #tpu.memory_space<vmem>>, %arg5: memref<1x128xf32, #tpu.memory_space<vmem>>, %arg6: memref<128x128xf32, #tpu.memory_space<vmem>>, %arg7: memref<1x128xf32, #tpu.memory_space<vmem>>, %arg8: memref<128x128xf32, #tpu.memory_space<vmem>>, %arg9: memref<1x128xf32, #tpu.memory_space<vmem>>, %arg10: memref<128x128xf32, #tpu.memory_space<vmem>>, %arg11: memref<1x128xf32, #tpu.memory_space<vmem>>, %arg12: memref<128x128xf32, #tpu.memory_space<vmem>>, %arg13: memref<1x128xf32, #tpu.memory_space<vmem>>, %arg14: memref<16x128xf32, #tpu.memory_space<vmem>>, %arg15: memref<16x128xf32, #tpu.memory_space<vmem>>) attributes {dimension_semantics = [#tpu.dimension_semantics<parallel>], iteration_bounds = array<i64: 1>, scalar_prefetch = 0 : i64, scratch_operands = 0 : i64, tpu.core_type = #tpu.core_type<tc>, window_params = [{transform_indices = @transform_0, window_bounds = array<i64: 16, 128>}, {pipeline_mode = #tpu.pipeline_mode<synchronous>, transform_indices = @transform_1, window_bounds = array<i64: 128, 128>}, {pipeline_mode = #tpu.pipeline_mode<synchronous>, transform_indices = @transform_2, window_bounds = array<i64: 1, 128>}, {pipeline_mode = #tpu.pipeline_mode<synchronous>, transform_indices = @transform_3, window_bounds = array<i64: 128, 128>}, {pipeline_mode = #tpu.pipeline_mode<synchronous>, transform_indices = @transform_4, window_bounds = array<i64: 1, 128>}, {pipeline_mode = #tpu.pipeline_mode<synchronous>, transform_indices = @transform_5, window_bounds = array<i64: 128, 128>}, {pipeline_mode = #tpu.pipeline_mode<synchronous>, transform_indices = @transform_6, window_bounds = array<i64: 1, 128>}, {pipeline_mode = #tpu.pipeline_mode<synchronous>, transform_indices = @transform_7, window_bounds = array<i64: 128, 128>}, {pipeline_mode = #tpu.pipeline_mode<synchronous>, transform_indices = @transform_8, window_bounds = array<i64: 1, 128>}, {pipeline_mode = #tpu.pipeline_mode<synchronous>, transform_indices = @transform_9, window_bounds = array<i64: 128, 128>}, {pipeline_mode = #tpu.pipeline_mode<synchronous>, transform_indices = @transform_10, window_bounds = array<i64: 1, 128>}, {pipeline_mode = #tpu.pipeline_mode<synchronous>, transform_indices = @transform_11, window_bounds = array<i64: 128, 128>}, {pipeline_mode = #tpu.pipeline_mode<synchronous>, transform_indices = @transform_12, window_bounds = array<i64: 1, 128>}, {transform_indices = @transform_13, window_bounds = array<i64: 16, 128>}, {transform_indices = @transform_14, window_bounds = array<i64: 16, 128>}]} {
    %c0 = arith.constant 0 : index
    %c0_0 = arith.constant 0 : index
    %0 = vector.load %arg1[%c0, %c0_0] : memref<16x128xf32, #tpu.memory_space<vmem>>, vector<16x128xf32>
    %c0_1 = arith.constant 0 : index
    %c0_2 = arith.constant 0 : index
    %1 = vector.load %arg2[%c0_1, %c0_2] : memref<128x128xf32, #tpu.memory_space<vmem>>, vector<128x128xf32>
    %c0_3 = arith.constant 0 : index
    %c0_4 = arith.constant 0 : index
    %2 = vector.load %arg3[%c0_3, %c0_4] : memref<1x128xf32, #tpu.memory_space<vmem>>, vector<1x128xf32>
    %cst = arith.constant dense<0.000000e+00> : vector<16x128xf32>
    %3 = tpu.matmul %0, %1, %cst {dimension_numbers = #tpu.dot_dimension_numbers<[1], [0], [0], [1], [0, 0, 1, 1], [], []>} : vector<16x128xf32>, vector<128x128xf32>, vector<16x128xf32> -> vector<16x128xf32>
    %4 = vector.broadcast %2 : vector<1x128xf32> to vector<16x128xf32>
    %5 = arith.addf %3, %4 : vector<16x128xf32>
    %cst_5 = arith.constant 0.000000e+00 : f32
    %6 = vector.broadcast %cst_5 : f32 to vector<16x128xf32>
    %7 = arith.maximumf %5, %6 : vector<16x128xf32>
    %c0_6 = arith.constant 0 : index
    %c0_7 = arith.constant 0 : index
    %8 = vector.load %arg4[%c0_6, %c0_7] : memref<128x128xf32, #tpu.memory_space<vmem>>, vector<128x128xf32>
    %c0_8 = arith.constant 0 : index
    %c0_9 = arith.constant 0 : index
    %9 = vector.load %arg5[%c0_8, %c0_9] : memref<1x128xf32, #tpu.memory_space<vmem>>, vector<1x128xf32>
    %cst_10 = arith.constant dense<0.000000e+00> : vector<16x128xf32>
    %10 = tpu.matmul %7, %8, %cst_10 {dimension_numbers = #tpu.dot_dimension_numbers<[1], [0], [0], [1], [0, 0, 1, 1], [], []>} : vector<16x128xf32>, vector<128x128xf32>, vector<16x128xf32> -> vector<16x128xf32>
    %11 = vector.broadcast %9 : vector<1x128xf32> to vector<16x128xf32>
    %12 = arith.addf %10, %11 : vector<16x128xf32>
    %cst_11 = arith.constant 0.000000e+00 : f32
    %13 = vector.broadcast %cst_11 : f32 to vector<16x128xf32>
    %14 = arith.maximumf %12, %13 : vector<16x128xf32>
    %c0_12 = arith.constant 0 : index
    %c0_13 = arith.constant 0 : index
    %15 = vector.load %arg6[%c0_12, %c0_13] : memref<128x128xf32, #tpu.memory_space<vmem>>, vector<128x128xf32>
    %c0_14 = arith.constant 0 : index
    %c0_15 = arith.constant 0 : index
    %16 = vector.load %arg7[%c0_14, %c0_15] : memref<1x128xf32, #tpu.memory_space<vmem>>, vector<1x128xf32>
    %cst_16 = arith.constant dense<0.000000e+00> : vector<16x128xf32>
    %17 = tpu.matmul %14, %15, %cst_16 {dimension_numbers = #tpu.dot_dimension_numbers<[1], [0], [0], [1], [0, 0, 1, 1], [], []>} : vector<16x128xf32>, vector<128x128xf32>, vector<16x128xf32> -> vector<16x128xf32>
    %18 = vector.broadcast %16 : vector<1x128xf32> to vector<16x128xf32>
    %19 = arith.addf %17, %18 : vector<16x128xf32>
    %c0_17 = arith.constant 0 : index
    %c0_18 = arith.constant 0 : index
    %20 = vector.load %arg15[%c0_17, %c0_18] : memref<16x128xf32, #tpu.memory_space<vmem>>, vector<16x128xf32>
    tpu.vector_store %arg15[%c0_17, %c0_18], %19 {strides = array<i32>} : memref<16x128xf32, #tpu.memory_space<vmem>>, vector<16x128xf32>,
    %c0_19 = arith.constant 0 : index
    %c0_20 = arith.constant 0 : index
    %21 = vector.load %arg8[%c0_19, %c0_20] : memref<128x128xf32, #tpu.memory_space<vmem>>, vector<128x128xf32>
    %c0_21 = arith.constant 0 : index
    %c0_22 = arith.constant 0 : index
    %22 = vector.load %arg9[%c0_21, %c0_22] : memref<1x128xf32, #tpu.memory_space<vmem>>, vector<1x128xf32>
    %cst_23 = arith.constant dense<0.000000e+00> : vector<16x128xf32>
    %23 = tpu.matmul %19, %21, %cst_23 {dimension_numbers = #tpu.dot_dimension_numbers<[1], [0], [0], [1], [0, 0, 1, 1], [], []>} : vector<16x128xf32>, vector<128x128xf32>, vector<16x128xf32> -> vector<16x128xf32>
    %24 = vector.broadcast %22 : vector<1x128xf32> to vector<16x128xf32>
    %25 = arith.addf %23, %24 : vector<16x128xf32>
    %cst_24 = arith.constant 0.000000e+00 : f32
    %26 = vector.broadcast %cst_24 : f32 to vector<16x128xf32>
    %27 = arith.maximumf %25, %26 : vector<16x128xf32>
    %c0_25 = arith.constant 0 : index
    %c0_26 = arith.constant 0 : index
    %28 = vector.load %arg10[%c0_25, %c0_26] : memref<128x128xf32, #tpu.memory_space<vmem>>, vector<128x128xf32>
    %c0_27 = arith.constant 0 : index
    %c0_28 = arith.constant 0 : index
    %29 = vector.load %arg11[%c0_27, %c0_28] : memref<1x128xf32, #tpu.memory_space<vmem>>, vector<1x128xf32>
    %cst_29 = arith.constant dense<0.000000e+00> : vector<16x128xf32>
    %30 = tpu.matmul %27, %28, %cst_29 {dimension_numbers = #tpu.dot_dimension_numbers<[1], [0], [0], [1], [0, 0, 1, 1], [], []>} : vector<16x128xf32>, vector<128x128xf32>, vector<16x128xf32> -> vector<16x128xf32>
    %31 = vector.broadcast %29 : vector<1x128xf32> to vector<16x128xf32>
    %32 = arith.addf %30, %31 : vector<16x128xf32>
    %cst_30 = arith.constant 0.000000e+00 : f32
    %33 = vector.broadcast %cst_30 : f32 to vector<16x128xf32>
    %34 = arith.maximumf %32, %33 : vector<16x128xf32>
    %c0_31 = arith.constant 0 : index
    %c0_32 = arith.constant 0 : index
    %35 = vector.load %arg12[%c0_31, %c0_32] : memref<128x128xf32, #tpu.memory_space<vmem>>, vector<128x128xf32>
    %c0_33 = arith.constant 0 : index
    %c0_34 = arith.constant 0 : index
    %36 = vector.load %arg13[%c0_33, %c0_34] : memref<1x128xf32, #tpu.memory_space<vmem>>, vector<1x128xf32>
    %cst_35 = arith.constant dense<0.000000e+00> : vector<16x128xf32>
    %37 = tpu.matmul %34, %35, %cst_35 {dimension_numbers = #tpu.dot_dimension_numbers<[1], [0], [0], [1], [0, 0, 1, 1], [], []>} : vector<16x128xf32>, vector<128x128xf32>, vector<16x128xf32> -> vector<16x128xf32>
    %38 = vector.broadcast %36 : vector<1x128xf32> to vector<16x128xf32>
    %39 = arith.addf %37, %38 : vector<16x128xf32>
    %c0_36 = arith.constant 0 : index
    %c0_37 = arith.constant 0 : index
    %40 = vector.load %arg14[%c0_36, %c0_37] : memref<16x128xf32, #tpu.memory_space<vmem>>, vector<16x128xf32>
    tpu.vector_store %arg14[%c0_36, %c0_37], %39 {strides = array<i32>} : memref<16x128xf32, #tpu.memory_space<vmem>>, vector<16x128xf32>,
    return
  }
  func.func @transform_0(%arg0: i32) -> (i32, i32) {
    %c0_i32 = arith.constant 0 : i32
    %c0_i32_0 = arith.constant 0 : i32
    return %arg0, %c0_i32 : i32, i32
  }
  func.func @transform_1(%arg0: i32) -> (i32, i32) {
    %c0_i32 = arith.constant 0 : i32
    %c0_i32_0 = arith.constant 0 : i32
    %c0_i32_1 = arith.constant 0 : i32
    return %c0_i32, %c0_i32_0 : i32, i32
  }
  func.func @transform_2(%arg0: i32) -> (i32, i32) {
    %c0_i32 = arith.constant 0 : i32
    %c0_i32_0 = arith.constant 0 : i32
    %c0_i32_1 = arith.constant 0 : i32
    return %c0_i32, %c0_i32_0 : i32, i32
  }
  func.func @transform_3(%arg0: i32) -> (i32, i32) {
    %c0_i32 = arith.constant 0 : i32
    %c0_i32_0 = arith.constant 0 : i32
    %c0_i32_1 = arith.constant 0 : i32
    return %c0_i32, %c0_i32_0 : i32, i32
  }
  func.func @transform_4(%arg0: i32) -> (i32, i32) {
    %c0_i32 = arith.constant 0 : i32
    %c0_i32_0 = arith.constant 0 : i32
    %c0_i32_1 = arith.constant 0 : i32
    return %c0_i32, %c0_i32_0 : i32, i32
  }
  func.func @transform_5(%arg0: i32) -> (i32, i32) {
    %c0_i32 = arith.constant 0 : i32
    %c0_i32_0 = arith.constant 0 : i32
    %c0_i32_1 = arith.constant 0 : i32
    return %c0_i32, %c0_i32_0 : i32, i32
  }
  func.func @transform_6(%arg0: i32) -> (i32, i32) {
    %c0_i32 = arith.constant 0 : i32
    %c0_i32_0 = arith.constant 0 : i32
    %c0_i32_1 = arith.constant 0 : i32
    return %c0_i32, %c0_i32_0 : i32, i32
  }
  func.func @transform_7(%arg0: i32) -> (i32, i32) {
    %c0_i32 = arith.constant 0 : i32
    %c0_i32_0 = arith.constant 0 : i32
    %c0_i32_1 = arith.constant 0 : i32
    return %c0_i32, %c0_i32_0 : i32, i32
  }
  func.func @transform_8(%arg0: i32) -> (i32, i32) {
    %c0_i32 = arith.constant 0 : i32
    %c0_i32_0 = arith.constant 0 : i32
    %c0_i32_1 = arith.constant 0 : i32
    return %c0_i32, %c0_i32_0 : i32, i32
  }
  func.func @transform_9(%arg0: i32) -> (i32, i32) {
    %c0_i32 = arith.constant 0 : i32
    %c0_i32_0 = arith.constant 0 : i32
    %c0_i32_1 = arith.constant 0 : i32
    return %c0_i32, %c0_i32_0 : i32, i32
  }
  func.func @transform_10(%arg0: i32) -> (i32, i32) {
    %c0_i32 = arith.constant 0 : i32
    %c0_i32_0 = arith.constant 0 : i32
    %c0_i32_1 = arith.constant 0 : i32
    return %c0_i32, %c0_i32_0 : i32, i32
  }
  func.func @transform_11(%arg0: i32) -> (i32, i32) {
    %c0_i32 = arith.constant 0 : i32
    %c0_i32_0 = arith.constant 0 : i32
    %c0_i32_1 = arith.constant 0 : i32
    return %c0_i32, %c0_i32_0 : i32, i32
  }
  func.func @transform_12(%arg0: i32) -> (i32, i32) {
    %c0_i32 = arith.constant 0 : i32
    %c0_i32_0 = arith.constant 0 : i32
    %c0_i32_1 = arith.constant 0 : i32
    return %c0_i32, %c0_i32_0 : i32, i32
  }
  func.func @transform_13(%arg0: i32) -> (i32, i32) {
    %c0_i32 = arith.constant 0 : i32
    %c0_i32_0 = arith.constant 0 : i32
    return %arg0, %c0_i32 : i32, i32
  }
  func.func @transform_14(%arg0: i32) -> (i32, i32) {
    %c0_i32 = arith.constant 0 : i32
    %c0_i32_0 = arith.constant 0 : i32
    return %arg0, %c0_i32 : i32, i32
  }
}

module attributes {stable_mosaic.version = 11 : i64} {
  func.func @kernel(%arg0: i32, %arg1: memref<16x128xf32, #tpu.memory_space<vmem>>, %arg2: memref<128x128xf32, #tpu.memory_space<vmem>>, %arg3: memref<1x128xf32, #tpu.memory_space<vmem>>, %arg4: memref<128x128xf32, #tpu.memory_space<vmem>>, %arg5: memref<1x128xf32, #tpu.memory_space<vmem>>, %arg6: memref<128x128xf32, #tpu.memory_space<vmem>>, %arg7: memref<1x128xf32, #tpu.memory_space<vmem>>, %arg8: memref<128x128xf32, #tpu.memory_space<vmem>>, %arg9: memref<1x128xf32, #tpu.memory_space<vmem>>, %arg10: memref<128x128xf32, #tpu.memory_space<vmem>>, %arg11: memref<1x128xf32, #tpu.memory_space<vmem>>, %arg12: memref<128x128xf32, #tpu.memory_space<vmem>>, %arg13: memref<1x128xf32, #tpu.memory_space<vmem>>, %arg14: memref<16x128xf32, #tpu.memory_space<vmem>>, %arg15: memref<16x128xf32, #tpu.memory_space<vmem>>) attributes {dimension_semantics = [#tpu.dimension_semantics<parallel>], iteration_bounds = array<i64: 1>, scalar_prefetch = 0 : i64, scratch_operands = 0 : i64, tpu.core_type = #tpu.core_type<tc>, window_params = [{transform_indices = @transform_0, window_bounds = array<i64: 16, 128>}, {pipeline_mode = #tpu.pipeline_mode<synchronous>, transform_indices = @transform_1, window_bounds = array<i64: 128, 128>}, {pipeline_mode = #tpu.pipeline_mode<synchronous>, transform_indices = @transform_2, window_bounds = array<i64: 1, 128>}, {pipeline_mode = #tpu.pipeline_mode<synchronous>, transform_indices = @transform_3, window_bounds = array<i64: 128, 128>}, {pipeline_mode = #tpu.pipeline_mode<synchronous>, transform_indices = @transform_4, window_bounds = array<i64: 1, 128>}, {pipeline_mode = #tpu.pipeline_mode<synchronous>, transform_indices = @transform_5, window_bounds = array<i64: 128, 128>}, {pipeline_mode = #tpu.pipeline_mode<synchronous>, transform_indices = @transform_6, window_bounds = array<i64: 1, 128>}, {pipeline_mode = #tpu.pipeline_mode<synchronous>, transform_indices = @transform_7, window_bounds = array<i64: 128, 128>}, {pipeline_mode = #tpu.pipeline_mode<synchronous>, transform_indices = @transform_8, window_bounds = array<i64: 1, 128>}, {pipeline_mode = #tpu.pipeline_mode<synchronous>, transform_indices = @transform_9, window_bounds = array<i64: 128, 128>}, {pipeline_mode = #tpu.pipeline_mode<synchronous>, transform_indices = @transform_10, window_bounds = array<i64: 1, 128>}, {pipeline_mode = #tpu.pipeline_mode<synchronous>, transform_indices = @transform_11, window_bounds = array<i64: 128, 128>}, {pipeline_mode = #tpu.pipeline_mode<synchronous>, transform_indices = @transform_12, window_bounds = array<i64: 1, 128>}, {transform_indices = @transform_13, window_bounds = array<i64: 16, 128>}, {transform_indices = @transform_14, window_bounds = array<i64: 16, 128>}]} {
    %c0 = arith.constant 0 : index
    %c0_0 = arith.constant 0 : index
    %0 = vector.load %arg1[%c0, %c0_0] : memref<16x128xf32, #tpu.memory_space<vmem>>, vector<16x128xf32>
    %c0_1 = arith.constant 0 : index
    %c0_2 = arith.constant 0 : index
    %1 = vector.load %arg2[%c0_1, %c0_2] : memref<128x128xf32, #tpu.memory_space<vmem>>, vector<128x128xf32>
    %c0_3 = arith.constant 0 : index
    %c0_4 = arith.constant 0 : index
    %2 = vector.load %arg3[%c0_3, %c0_4] : memref<1x128xf32, #tpu.memory_space<vmem>>, vector<1x128xf32>
    %cst = arith.constant dense<0.000000e+00> : vector<16x128xf32>
    %3 = tpu.matmul %0, %1, %cst {dimension_numbers = #tpu.dot_dimension_numbers<[1], [0], [0], [1], [0, 0, 1, 1], [], []>} : vector<16x128xf32>, vector<128x128xf32>, vector<16x128xf32> -> vector<16x128xf32>
    %4 = vector.broadcast %2 : vector<1x128xf32> to vector<16x128xf32>
    %5 = arith.addf %3, %4 : vector<16x128xf32>
    %cst_5 = arith.constant 0.000000e+00 : f32
    %6 = vector.broadcast %cst_5 : f32 to vector<16x128xf32>
    %7 = arith.maximumf %5, %6 : vector<16x128xf32>
    %c0_6 = arith.constant 0 : index
    %c0_7 = arith.constant 0 : index
    %8 = vector.load %arg4[%c0_6, %c0_7] : memref<128x128xf32, #tpu.memory_space<vmem>>, vector<128x128xf32>
    %c0_8 = arith.constant 0 : index
    %c0_9 = arith.constant 0 : index
    %9 = vector.load %arg5[%c0_8, %c0_9] : memref<1x128xf32, #tpu.memory_space<vmem>>, vector<1x128xf32>
    %cst_10 = arith.constant dense<0.000000e+00> : vector<16x128xf32>
    %10 = tpu.matmul %7, %8, %cst_10 {dimension_numbers = #tpu.dot_dimension_numbers<[1], [0], [0], [1], [0, 0, 1, 1], [], []>} : vector<16x128xf32>, vector<128x128xf32>, vector<16x128xf32> -> vector<16x128xf32>
    %11 = vector.broadcast %9 : vector<1x128xf32> to vector<16x128xf32>
    %12 = arith.addf %10, %11 : vector<16x128xf32>
    %cst_11 = arith.constant 0.000000e+00 : f32
    %13 = vector.broadcast %cst_11 : f32 to vector<16x128xf32>
    %14 = arith.maximumf %12, %13 : vector<16x128xf32>
    %c0_12 = arith.constant 0 : index
    %c0_13 = arith.constant 0 : index
    %15 = vector.load %arg6[%c0_12, %c0_13] : memref<128x128xf32, #tpu.memory_space<vmem>>, vector<128x128xf32>
    %c0_14 = arith.constant 0 : index
    %c0_15 = arith.constant 0 : index
    %16 = vector.load %arg7[%c0_14, %c0_15] : memref<1x128xf32, #tpu.memory_space<vmem>>, vector<1x128xf32>
    %cst_16 = arith.constant dense<0.000000e+00> : vector<16x128xf32>
    %17 = tpu.matmul %14, %15, %cst_16 {dimension_numbers = #tpu.dot_dimension_numbers<[1], [0], [0], [1], [0, 0, 1, 1], [], []>} : vector<16x128xf32>, vector<128x128xf32>, vector<16x128xf32> -> vector<16x128xf32>
    %18 = vector.broadcast %16 : vector<1x128xf32> to vector<16x128xf32>
    %19 = arith.addf %17, %18 : vector<16x128xf32>
    %c0_17 = arith.constant 0 : index
    %c0_18 = arith.constant 0 : index
    %20 = vector.load %arg15[%c0_17, %c0_18] : memref<16x128xf32, #tpu.memory_space<vmem>>, vector<16x128xf32>
    tpu.vector_store %arg15[%c0_17, %c0_18], %19 {strides = array<i32>} : memref<16x128xf32, #tpu.memory_space<vmem>>, vector<16x128xf32>,
    %c0_19 = arith.constant 0 : index
    %c0_20 = arith.constant 0 : index
    %21 = vector.load %arg8[%c0_19, %c0_20] : memref<128x128xf32, #tpu.memory_space<vmem>>, vector<128x128xf32>
    %c0_21 = arith.constant 0 : index
    %c0_22 = arith.constant 0 : index
    %22 = vector.load %arg9[%c0_21, %c0_22] : memref<1x128xf32, #tpu.memory_space<vmem>>, vector<1x128xf32>
    %cst_23 = arith.constant dense<0.000000e+00> : vector<16x128xf32>
    %23 = tpu.matmul %19, %21, %cst_23 {dimension_numbers = #tpu.dot_dimension_numbers<[1], [0], [0], [1], [0, 0, 1, 1], [], []>} : vector<16x128xf32>, vector<128x128xf32>, vector<16x128xf32> -> vector<16x128xf32>
    %24 = vector.broadcast %22 : vector<1x128xf32> to vector<16x128xf32>
    %25 = arith.addf %23, %24 : vector<16x128xf32>
    %cst_24 = arith.constant 0.000000e+00 : f32
    %26 = vector.broadcast %cst_24 : f32 to vector<16x128xf32>
    %27 = arith.maximumf %25, %26 : vector<16x128xf32>
    %c0_25 = arith.constant 0 : index
    %c0_26 = arith.constant 0 : index
    %28 = vector.load %arg10[%c0_25, %c0_26] : memref<128x128xf32, #tpu.memory_space<vmem>>, vector<128x128xf32>
    %c0_27 = arith.constant 0 : index
    %c0_28 = arith.constant 0 : index
    %29 = vector.load %arg11[%c0_27, %c0_28] : memref<1x128xf32, #tpu.memory_space<vmem>>, vector<1x128xf32>
    %cst_29 = arith.constant dense<0.000000e+00> : vector<16x128xf32>
    %30 = tpu.matmul %27, %28, %cst_29 {dimension_numbers = #tpu.dot_dimension_numbers<[1], [0], [0], [1], [0, 0, 1, 1], [], []>} : vector<16x128xf32>, vector<128x128xf32>, vector<16x128xf32> -> vector<16x128xf32>
    %31 = vector.broadcast %29 : vector<1x128xf32> to vector<16x128xf32>
    %32 = arith.addf %30, %31 : vector<16x128xf32>
    %cst_30 = arith.constant 0.000000e+00 : f32
    %33 = vector.broadcast %cst_30 : f32 to vector<16x128xf32>
    %34 = arith.maximumf %32, %33 : vector<16x128xf32>
    %c0_31 = arith.constant 0 : index
    %c0_32 = arith.constant 0 : index
    %35 = vector.load %arg12[%c0_31, %c0_32] : memref<128x128xf32, #tpu.memory_space<vmem>>, vector<128x128xf32>
    %c0_33 = arith.constant 0 : index
    %c0_34 = arith.constant 0 : index
    %36 = vector.load %arg13[%c0_33, %c0_34] : memref<1x128xf32, #tpu.memory_space<vmem>>, vector<1x128xf32>
    %cst_35 = arith.constant dense<0.000000e+00> : vector<16x128xf32>
    %37 = tpu.matmul %34, %35, %cst_35 {dimension_numbers = #tpu.dot_dimension_numbers<[1], [0], [0], [1], [0, 0, 1, 1], [], []>} : vector<16x128xf32>, vector<128x128xf32>, vector<16x128xf32> -> vector<16x128xf32>
    %38 = vector.broadcast %36 : vector<1x128xf32> to vector<16x128xf32>
    %39 = arith.addf %37, %38 : vector<16x128xf32>
    %c0_36 = arith.constant 0 : index
    %c0_37 = arith.constant 0 : index
    %40 = vector.load %arg14[%c0_36, %c0_37] : memref<16x128xf32, #tpu.memory_space<vmem>>, vector<16x128xf32>
    tpu.vector_store %arg14[%c0_36, %c0_37], %39 {strides = array<i32>} : memref<16x128xf32, #tpu.memory_space<vmem>>, vector<16x128xf32>,
    return
  }
  func.func @transform_0(%arg0: i32) -> (i32, i32) {
    %c0_i32 = arith.constant 0 : i32
    %c0_i32_0 = arith.constant 0 : i32
    return %arg0, %c0_i32 : i32, i32
  }
  func.func @transform_1(%arg0: i32) -> (i32, i32) {
    %c0_i32 = arith.constant 0 : i32
    %c0_i32_0 = arith.constant 0 : i32
    %c0_i32_1 = arith.constant 0 : i32
    return %c0_i32, %c0_i32_0 : i32, i32
  }
  func.func @transform_2(%arg0: i32) -> (i32, i32) {
    %c0_i32 = arith.constant 0 : i32
    %c0_i32_0 = arith.constant 0 : i32
    %c0_i32_1 = arith.constant 0 : i32
    return %c0_i32, %c0_i32_0 : i32, i32
  }
  func.func @transform_3(%arg0: i32) -> (i32, i32) {
    %c0_i32 = arith.constant 0 : i32
    %c0_i32_0 = arith.constant 0 : i32
    %c0_i32_1 = arith.constant 0 : i32
    return %c0_i32, %c0_i32_0 : i32, i32
  }
  func.func @transform_4(%arg0: i32) -> (i32, i32) {
    %c0_i32 = arith.constant 0 : i32
    %c0_i32_0 = arith.constant 0 : i32
    %c0_i32_1 = arith.constant 0 : i32
    return %c0_i32, %c0_i32_0 : i32, i32
  }
  func.func @transform_5(%arg0: i32) -> (i32, i32) {
    %c0_i32 = arith.constant 0 : i32
    %c0_i32_0 = arith.constant 0 : i32
    %c0_i32_1 = arith.constant 0 : i32
    return %c0_i32, %c0_i32_0 : i32, i32
  }
  func.func @transform_6(%arg0: i32) -> (i32, i32) {
    %c0_i32 = arith.constant 0 : i32
    %c0_i32_0 = arith.constant 0 : i32
    %c0_i32_1 = arith.constant 0 : i32
    return %c0_i32, %c0_i32_0 : i32, i32
  }
  func.func @transform_7(%arg0: i32) -> (i32, i32) {
    %c0_i32 = arith.constant 0 : i32
    %c0_i32_0 = arith.constant 0 : i32
    %c0_i32_1 = arith.constant 0 : i32
    return %c0_i32, %c0_i32_0 : i32, i32
  }
  func.func @transform_8(%arg0: i32) -> (i32, i32) {
    %c0_i32 = arith.constant 0 : i32
    %c0_i32_0 = arith.constant 0 : i32
    %c0_i32_1 = arith.constant 0 : i32
    return %c0_i32, %c0_i32_0 : i32, i32
  }
  func.func @transform_9(%arg0: i32) -> (i32, i32) {
    %c0_i32 = arith.constant 0 : i32
    %c0_i32_0 = arith.constant 0 : i32
    %c0_i32_1 = arith.constant 0 : i32
    return %c0_i32, %c0_i32_0 : i32, i32
  }
  func.func @transform_10(%arg0: i32) -> (i32, i32) {
    %c0_i32 = arith.constant 0 : i32
    %c0_i32_0 = arith.constant 0 : i32
    %c0_i32_1 = arith.constant 0 : i32
    return %c0_i32, %c0_i32_0 : i32, i32
  }
  func.func @transform_11(%arg0: i32) -> (i32, i32) {
    %c0_i32 = arith.constant 0 : i32
    %c0_i32_0 = arith.constant 0 : i32
    %c0_i32_1 = arith.constant 0 : i32
    return %c0_i32, %c0_i32_0 : i32, i32
  }
  func.func @transform_12(%arg0: i32) -> (i32, i32) {
    %c0_i32 = arith.constant 0 : i32
    %c0_i32_0 = arith.constant 0 : i32
    %c0_i32_1 = arith.constant 0 : i32
    return %c0_i32, %c0_i32_0 : i32, i32
  }
  func.func @transform_13(%arg0: i32) -> (i32, i32) {
    %c0_i32 = arith.constant 0 : i32
    %c0_i32_0 = arith.constant 0 : i32
    return %arg0, %c0_i32 : i32, i32
  }
  func.func @transform_14(%arg0: i32) -> (i32, i32) {
    %c0_i32 = arith.constant 0 : i32
    %c0_i32_0 = arith.constant 0 : i32
    return %arg0, %c0_i32 : i32, i32
  }
}

</mosaic_0001>

<bundles_post_ra>
// kernel: tpu_custom_call.1
= control target key start
LH: loop header
LB: loop body
LE: loop exit
PB: predicated region body
PF: predicated region fallthrough
CT: control target
= control target key end

     0   :  { %20 = vsyncpa [#allocation3], 0  ;;  %s1778_s0 = inlined_call_operand.hbm [shape: f32[16,128], index: 0, kind: input, shape index: {}]   ;;  %s1779_s1 = inlined_call_operand.hbm [shape: f32[128,128], index: 1, kind: input, shape index: {}]   ;;  %s1780_s2 = inlined_call_operand.vmem [shape: f32[1,128], index: 2, kind: input, shape index: {}]   ;;  %s1781_s3 = inlined_call_operand.hbm [shape: f32[128,128], index: 3, kind: input, shape index: {}]   ;;  %s1782_s4 = inlined_call_operand.vmem [shape: f32[1,128], index: 4, kind: input, shape index: {}]   ;;  %s1783_s5 = inlined_call_operand.hbm [shape: f32[128,128], index: 5, kind: input, shape index: {}]   ;;  %s1784_s6 = inlined_call_operand.vmem [shape: f32[1,128], index: 6, kind: input, shape index: {}]   ;;  %s1785_s7 = inlined_call_operand.hbm [shape: f32[128,128], index: 7, kind: input, shape index: {}]   ;;  %s1786_s8 = inlined_call_operand.vmem [shape: f32[1,128], index: 8, kind: input, shape index: {}]   ;;  %s1787_s9 = inlined_call_operand.hbm [shape: f32[128,128], index: 9, kind: input, shape index: {}]   ;;  %s1788_s10 = inlined_call_operand.vmem [shape: f32[1,128], index: 10, kind: input, shape index: {}]   ;;  %s1789_s11 = inlined_call_operand.hbm [shape: f32[128,128], index: 11, kind: input, shape index: {}]   ;;  %s1790_s12 = inlined_call_operand.vmem [shape: f32[1,128], index: 12, kind: input, shape index: {}]   ;;  %s1791_s13 = inlined_call_operand.hbm [shape: f32[16,128], index: 13, kind: output, shape index: {0}]   ;;  %s1792_s14 = inlined_call_operand.hbm [shape: f32[16,128], index: 14, kind: output, shape index: {1}]  }
   0x1   :  { %21 = vsyncpa [#allocation6], 0 }
   0x2   :  { %22 = vsyncpa [#allocation9], 0 }
   0x3   :  { %23 = vsyncpa [#allocation12], 0 }
   0x4   :  { %24 = vsyncpa [#allocation4], 0 }
   0x5   :  { %25 = vsyncpa [#allocation16], 0  ;;  %s1518_s29 = smov [#allocation5]   ;;  %s1519_s15 = smov [#allocation8]  }
   0x6   :  { %s43_s30 = sshll.u32 %s1518_s29, 4  ;;  %s71_s16 = sshll.u32 %s1519_s15, 4  ;;  %s44_s30 = int_to_ptr.vmem [resolvable:$true] %s43_s30  ;;  %s1604_s16 = int_to_ptr.vmem [resolvable:$true] %s71_s16 }
   0x7   :  { %s1308_s19 = scalar_lea.hbm %s1779_s1, 2048 }
   0x8   :  { %p1309_p0 = scmp.ne.s32.totalorder %s1779_s1, %s1308_s19  ;;  %p1312_p1 = scmp.lt.u32.totalorder %s1308_s19, %s1779_s1 }
   0xa   :  { %p1314_p2 = pnand %p1312_p1, %p1309_p0 }
   0xc   :  { %1317 = shalt.err (!%p1314_p2)
}
   0xd   :  { %s1318_s24 = scalar_lea.vmem %s44_s30, 2048  ;;  %p1323_p4 = scmp.lt.s32.totalorder %s44_s30, %s44_s30 }
   0xe   :  { %p1319_p3 = scmp.ne.s32.totalorder %s44_s30, %s1318_s24  ;;  %p1324_p5 = scmp.lt.s32.totalorder %s1318_s24, %s1318_s24 }
  0x10   :  { %p1325_p6 = por %p1324_p5, %p1323_p4 }
  0x12   :  { %p1326_p7 = pnand %p1325_p6, %p1319_p3 }
  0x14   :  { %1329 = shalt.err (!%p1326_p7)
}
  0x15   :  { %s1520_s25 = smov 128   ;;  %s1521_s26 = smov 8  }
  0x16   :  { %49 = dma.hbm_to_vmem [thread:$0]  %s1779_s1, 2048, %s44_s30, [#allocation6], %s1520_s25, %s1520_s25, %s1521_s26  }
  0x17   :  { %s1330_s17 = scalar_lea.hbm %s1783_s5, 2048 }
  0x18   :  { %p1331_p8 = scmp.ne.s32.totalorder %s1783_s5, %s1330_s17  ;;  %p1334_p9 = scmp.lt.u32.totalorder %s1330_s17, %s1783_s5 }
  0x1a   :  { %p1336_p10 = pnand %p1334_p9, %p1331_p8 }
  0x1c   :  { %1339 = shalt.err (!%p1336_p10)
}
  0x1d   :  { %s1340_s22 = scalar_lea.vmem %s1604_s16, 2048  ;;  %p1345_p12 = scmp.lt.s32.totalorder %s1604_s16, %s1604_s16 }
  0x1e   :  { %p1341_p11 = scmp.ne.s32.totalorder %s1604_s16, %s1340_s22  ;;  %p1346_p13 = scmp.lt.s32.totalorder %s1340_s22, %s1340_s22 }
  0x20   :  { %p1347_p0 = por %p1346_p13, %p1345_p12 }
  0x22   :  { %p1348_p1 = pnand %p1347_p0, %p1341_p11 }
  0x24   :  { %1351 = shalt.err (!%p1348_p1)
}
  0x25   :  { %77 = dma.hbm_to_vmem [thread:$0]  %s1783_s5, 2048, %s1604_s16, [#allocation9], %s1520_s25, %s1520_s25, %s1521_s26  }
  0x26   :  { %s1522_s23 = smov [#allocation11]   ;;  %s1523_s27 = smov [#allocation2]  }
  0x27   :  { %s99_s24 = sshll.u32 %s1522_s23, 4  ;;  %s31_s28 = sshll.u32 %s1523_s27, 4  ;;  %s100_s24 = int_to_ptr.vmem [resolvable:$true] %s99_s24  ;;  %s1641_s28 = int_to_ptr.vmem [resolvable:$true] %s31_s28 }
  0x28   :  { %s1352_s17 = scalar_lea.hbm %s1787_s9, 2048 }
  0x29   :  { %p1353_p2 = scmp.ne.s32.totalorder %s1787_s9, %s1352_s17  ;;  %p1356_p3 = scmp.lt.u32.totalorder %s1352_s17, %s1787_s9 }
  0x2b   :  { %p1358_p4 = pnand %p1356_p3, %p1353_p2 }
  0x2d   :  { %1361 = shalt.err (!%p1358_p4)
}
  0x2e   :  { %s1362_s5 = scalar_lea.vmem %s100_s24, 2048  ;;  %p1367_p6 = scmp.lt.s32.totalorder %s100_s24, %s100_s24 }
  0x2f   :  { %p1363_p5 = scmp.ne.s32.totalorder %s100_s24, %s1362_s5  ;;  %p1368_p7 = scmp.lt.s32.totalorder %s1362_s5, %s1362_s5 }
  0x31   :  { %p1369_p8 = por %p1368_p7, %p1367_p6 }
  0x33   :  { %p1370_p9 = pnand %p1369_p8, %p1363_p5 }
  0x35   :  { %1373 = shalt.err (!%p1370_p9)
}
  0x36   :  { %105 = dma.hbm_to_vmem [thread:$0]  %s1787_s9, 2048, %s100_s24, [#allocation12], %s1520_s25, %s1520_s25, %s1521_s26  }
  0x37   :  { %s1374_s23 = scalar_lea.hbm %s1778_s0, 256 }
  0x38   :  { %p1375_p10 = scmp.ne.s32.totalorder %s1778_s0, %s1374_s23  ;;  %p1378_p11 = scmp.lt.u32.totalorder %s1374_s23, %s1778_s0 }
  0x3a   :  { %p1380_p12 = pnand %p1378_p11, %p1375_p10 }
  0x3c   :  { %1383 = shalt.err (!%p1380_p12)
}
  0x3d   :  { %s1384_s18 = scalar_lea.vmem %s1641_s28, 256  ;;  %p1389_p0 = scmp.lt.s32.totalorder %s1641_s28, %s1641_s28 }
  0x3e   :  { %p1385_p13 = scmp.ne.s32.totalorder %s1641_s28, %s1384_s18  ;;  %p1390_p1 = scmp.lt.s32.totalorder %s1384_s18, %s1384_s18 }
  0x40   :  { %p1391_p2 = por %p1390_p1, %p1389_p0 }
  0x42   :  { %p1392_p3 = pnand %p1391_p2, %p1385_p13 }
  0x44   :  { %1395 = shalt.err (!%p1392_p3)
}
  0x45   :  { %37 = dma.hbm_to_vmem [thread:$0]  %s1778_s0, 256, %s1641_s28, [#allocation3], %s1520_s25, %s1520_s25, %s1521_s26  }
  0x46   :  { %s1524_s19 = smov [#allocation7]   ;;  %s1525_s21 = smov [#allocation10]  }
  0x47   :  { %s57_s20 = sshll.u32 %s1524_s19, 4  ;;  %s85_s5 = sshll.u32 %s1525_s21, 4  ;;  %s58_s20 = int_to_ptr.vmem [resolvable:$true] %s57_s20  ;;  %s1678_s5 = int_to_ptr.vmem [resolvable:$true] %s85_s5 }
  0x48   :  { %s1396_s1 = scalar_lea.hbm %s1781_s3, 2048 }
  0x49   :  { %p1397_p4 = scmp.ne.s32.totalorder %s1781_s3, %s1396_s1  ;;  %p1400_p5 = scmp.lt.u32.totalorder %s1396_s1, %s1781_s3 }
  0x4b   :  { %p1402_p6 = pnand %p1400_p5, %p1397_p4 }
  0x4d   :  { %1405 = shalt.err (!%p1402_p6)
}
  0x4e   :  { %s1406_s0 = scalar_lea.vmem %s58_s20, 2048  ;;  %p1411_p8 = scmp.lt.s32.totalorder %s58_s20, %s58_s20 }
  0x4f   :  { %p1407_p7 = scmp.ne.s32.totalorder %s58_s20, %s1406_s0  ;;  %p1412_p9 = scmp.lt.s32.totalorder %s1406_s0, %s1406_s0 }
  0x51   :  { %p1413_p10 = por %p1412_p9, %p1411_p8 }
  0x53   :  { %p1414_p11 = pnand %p1413_p10, %p1407_p7 }
  0x55   :  { %1417 = shalt.err (!%p1414_p11)
}
  0x56   :  { %63 = dma.hbm_to_vmem [thread:$0]  %s1781_s3, 2048, %s58_s20, [#allocation6], %s1520_s25, %s1520_s25, %s1521_s26  }
  0x57   :  { %s1418_s9 = scalar_lea.hbm %s1785_s7, 2048 }
  0x58   :  { %p1419_p12 = scmp.ne.s32.totalorder %s1785_s7, %s1418_s9  ;;  %p1422_p13 = scmp.lt.u32.totalorder %s1418_s9, %s1785_s7 }
  0x5a   :  { %p1424_p0 = pnand %p1422_p13, %p1419_p12 }
  0x5c   :  { %1427 = shalt.err (!%p1424_p0)
}
  0x5d   :  { %s1428_s22 = scalar_lea.vmem %s1678_s5, 2048  ;;  %p1433_p2 = scmp.lt.s32.totalorder %s1678_s5, %s1678_s5 }
  0x5e   :  { %p1429_p1 = scmp.ne.s32.totalorder %s1678_s5, %s1428_s22  ;;  %p1434_p3 = scmp.lt.s32.totalorder %s1428_s22, %s1428_s22 }
  0x60   :  { %p1435_p4 = por %p1434_p3, %p1433_p2 }
  0x62   :  { %p1436_p5 = pnand %p1435_p4, %p1429_p1 }
  0x64   :  { %1439 = shalt.err (!%p1436_p5)
}
  0x65   :  { %91 = dma.hbm_to_vmem [thread:$0]  %s1785_s7, 2048, %s1678_s5, [#allocation9], %s1520_s25, %s1520_s25, %s1521_s26  }
  0x66   :  { %s1526_s1 = smov [#allocation13]   ;;  %s1440_s29 = scalar_lea.hbm %s1789_s11, 2048 }
  0x67   :  { %s113_s30 = sshll.u32 %s1526_s1, 4  ;;  %p1441_p6 = scmp.ne.s32.totalorder %s1789_s11, %s1440_s29  ;;  %s114_s30 = int_to_ptr.vmem [resolvable:$true] %s113_s30 }
  0x68   :  { %p1444_p7 = scmp.lt.u32.totalorder %s1440_s29, %s1789_s11 }
  0x6a   :  { %p1446_p8 = pnand %p1444_p7, %p1441_p6 }
  0x6c   :  { %1449 = shalt.err (!%p1446_p8)
}
  0x6d   :  { %s1450_s18 = scalar_lea.vmem %s114_s30, 2048  ;;  %p1455_p10 = scmp.lt.s32.totalorder %s114_s30, %s114_s30 }
  0x6e   :  { %p1451_p9 = scmp.ne.s32.totalorder %s114_s30, %s1450_s18  ;;  %p1456_p11 = scmp.lt.s32.totalorder %s1450_s18, %s1450_s18 }
  0x70   :  { %p1457_p12 = por %p1456_p11, %p1455_p10 }
  0x72   :  { %p1458_p13 = pnand %p1457_p12, %p1451_p9 }
  0x74   :  { %1461 = shalt.err (!%p1458_p13)
}
  0x75   :  { %119 = dma.hbm_to_vmem [thread:$0]  %s1789_s11, 2048, %s114_s30, [#allocation12], %s1520_s25, %s1520_s25, %s1521_s26  }
  0x76   :  { %1506 = dma.done.wait [#allocation3], 256  }
  0x77   :  { %1507 = vsyncadd [#allocation3], 4294967040 }
  0x78   :  { %1508 = dma.done.wait [#allocation6], 4096  }
  0x79   :  { %1509 = vsyncadd [#allocation6], 4294963200 }
  0x7a   :  { %1510 = dma.done.wait [#allocation9], 4096  }
  0x7b   :  { %1511 = vsyncadd [#allocation9], 4294963200 }
  0x7c   :  { %1512 = dma.done.wait [#allocation12], 4096  }
  0x7d   :  { %1513 = vsyncadd [#allocation12], 4294963200  ;;  %v145_v0 = vld [vmem:[#allocation5] sm:$0xff]  ;;  %v146_v1 = vld [vmem:[#allocation5 + $0x8] sm:$0xff] }
  0x7e   :  { %v147_v2 = vld [vmem:[#allocation5 + $0x10] sm:$0xff]  ;;  %v1105_v3 = vpack.c.bf16 %v146_v1, %v145_v0  ;;  %v148_v4 = vld [vmem:[#allocation5 + $0x18] sm:$0xff]  ;;  %v149_v6 = vld [vmem:[#allocation5 + $0x20] sm:$0xff] }
  0x7f   :  { %v1109_v5 = vpack.c.bf16 %v148_v4, %v147_v2  ;;  %v150_v7 = vld [vmem:[#allocation5 + $0x28] sm:$0xff]  ;;  %v151_v9 = vld [vmem:[#allocation5 + $0x30] sm:$0xff]  ;;  %v152_v10 = vld [vmem:[#allocation5 + $0x38] sm:$0xff] }
  0x80   :  { %1106 = vmatprep.subr.bf16.mxu0 %v1105_v3  ;;  %v1113_v8 = vpack.c.bf16 %v150_v7, %v149_v6  ;;  %v143_v11 = vld [vmem:[#allocation2] sm:$0xff]  ;;  %v245_v12 = vld [vmem:[#allocation7] sm:$0xff]  ;;  %v246_v13 = vld [vmem:[#allocation7 + $0x8] sm:$0xff]  ;;  %v1117_v20 = vpack.c.bf16 %v152_v10, %v151_v9 }
  0x81   :  { %1108 = vmatpush3.bf16.msra.mxu0 %v1105_v3  ;;  %927 = vmatprep.mubr.f32.mxu0 %v143_v11  ;;  %v247_v14 = vld [vmem:[#allocation7 + $0x10] sm:$0xff]  ;;  %v1137_v15 = vpack.c.bf16 %v246_v13, %v245_v12  ;;  %v248_v16 = vld [vmem:[#allocation7 + $0x18] sm:$0xff]  ;;  %v249_v18 = vld [vmem:[#allocation7 + $0x20] sm:$0xff] }
  0x82   :  { %1110 = vmatprep.subr.bf16.mxu0 %v1109_v5  ;;  %v1141_v17 = vpack.c.bf16 %v248_v16, %v247_v14  ;;  %v250_v19 = vld [vmem:[#allocation7 + $0x28] sm:$0xff]  ;;  %v153_v21 = vld [vmem:[#allocation5 + $0x40] sm:$0xff]  ;;  %v251_v24 = vld [vmem:[#allocation7 + $0x30] sm:$0xff] }
  0x83   :  { %1138 = vmatprep.subr.bf16.mxu1 %v1137_v15  ;;  %v154_v22 = vld [vmem:[#allocation5 + $0x48] sm:$0xff]  ;;  %v1145_v23 = vpack.c.bf16 %v250_v19, %v249_v18  ;;  %v252_v25 = vld [vmem:[#allocation7 + $0x38] sm:$0xff]  ;;  %v155_v27 = vld [vmem:[#allocation5 + $0x50] sm:$0xff] }
  0x84   :  { %1140 = vmatpush3.bf16.msra.mxu1 %v1137_v15  ;;  %v1121_v26 = vpack.c.bf16 %v154_v22, %v153_v21  ;;  %v156_v28 = vld [vmem:[#allocation5 + $0x58] sm:$0xff]  ;;  %v1149_v29 = vpack.c.bf16 %v252_v25, %v251_v24  ;;  %v253_v30 = vld [vmem:[#allocation7 + $0x40] sm:$0xff]  ;;  %v254_v31 = vld [vmem:[#allocation7 + $0x48] sm:$0xff] }
  0x85   :  { %1112 = vmatpush3.bf16.msra.mxu0 %v1109_v5  ;;  %1142 = vmatprep.subr.bf16.mxu1 %v1141_v17  ;;  %v1125_v32 = vpack.c.bf16 %v156_v28, %v155_v27  ;;  %v157_v33 = vld [vmem:[#allocation5 + $0x60] sm:$0xff]  ;;  %v158_v34 = vld [vmem:[#allocation5 + $0x68] sm:$0xff]  ;;  %v1153_v35 = vpack.c.bf16 %v254_v31, %v253_v30  ;;  %v255_v36 = vld [vmem:[#allocation7 + $0x50] sm:$0xff] }
  0x86   :  { %1114 = vmatprep.subr.bf16.mxu0 %v1113_v8  ;;  %v256_v37 = vld [vmem:[#allocation7 + $0x58] sm:$0xff]  ;;  %v1129_v38 = vpack.c.bf16 %v158_v34, %v157_v33  ;;  %v159_v39 = vld [vmem:[#allocation5 + $0x70] sm:$0xff]  ;;  %v257_v42 = vld [vmem:[#allocation7 + $0x60] sm:$0xff] }
  0x87   :  { %v160_v40 = vld [vmem:[#allocation5 + $0x78] sm:$0xff]  ;;  %v1157_v41 = vpack.c.bf16 %v256_v37, %v255_v36  ;;  %v258_v43 = vld [vmem:[#allocation7 + $0x68] sm:$0xff]  ;;  %v259_v47 = vld [vmem:[#allocation7 + $0x70] sm:$0xff] }
  0x88   :  { %1144 = vmatpush3.bf16.msra.mxu1 %v1141_v17  ;;  %v1133_v44 = vpack.c.bf16 %v160_v40, %v159_v39  ;;  %v1161_v45 = vpack.c.bf16 %v258_v43, %v257_v42  ;;  %v144_v46 = vld [vmem:[#allocation2 + $0x8] sm:$0xff]  ;;  %v345_v50 = vld [vmem:[#allocation8] sm:$0xff]  ;;  %v346_v51 = vld [vmem:[#allocation8 + $0x8] sm:$0xff] }
  0x89   :  { %1116 = vmatpush3.bf16.msra.mxu0 %v1113_v8  ;;  %1146 = vmatprep.subr.bf16.mxu1 %v1145_v23  ;;  %v260_v48 = vld [vmem:[#allocation7 + $0x78] sm:$0xff]  ;;  %v347_v52 = vld [vmem:[#allocation8 + $0x10] sm:$0xff]  ;;  %v1169_v53 = vpack.c.bf16 %v346_v51, %v345_v50  ;;  %v349_v56 = vld [vmem:[#allocation8 + $0x20] sm:$0xff] }
  0x8a   :  { %1118 = vmatprep.subr.bf16.mxu0 %v1117_v20  ;;  %v1165_v49 = vpack.c.bf16 %v260_v48, %v259_v47  ;;  %v348_v54 = vld [vmem:[#allocation8 + $0x18] sm:$0xff]  ;;  %v350_v57 = vld [vmem:[#allocation8 + $0x28] sm:$0xff]  ;;  %v351_v59 = vld [vmem:[#allocation8 + $0x30] sm:$0xff] }
  0x8b   :  { %v1173_v55 = vpack.c.bf16 %v348_v54, %v347_v52  ;;  %v1177_v58 = vpack.c.bf16 %v350_v57, %v349_v56  ;;  %v352_v60 = vld [vmem:[#allocation8 + $0x38] sm:$0xff]  ;;  %v353_v62 = vld [vmem:[#allocation8 + $0x40] sm:$0xff]  ;;  %v354_v63 = vld [vmem:[#allocation8 + $0x48] sm:$0xff] }
  0x8c   :  { %1148 = vmatpush3.bf16.msra.mxu1 %v1145_v23  ;;  %v1181_v61 = vpack.c.bf16 %v352_v60, %v351_v59  ;;  %v1185_v0 = vpack.c.bf16 %v354_v63, %v353_v62  ;;  %v355_v1 = vld [vmem:[#allocation8 + $0x50] sm:$0xff]  ;;  %v356_v2 = vld [vmem:[#allocation8 + $0x58] sm:$0xff]  ;;  %v357_v4 = vld [vmem:[#allocation8 + $0x60] sm:$0xff] }
  0x8d   :  { %1120 = vmatpush3.bf16.msra.mxu0 %v1117_v20  ;;  %1150 = vmatprep.subr.bf16.mxu1 %v1149_v29  ;;  %v1189_v3 = vpack.c.bf16 %v356_v2, %v355_v1  ;;  %v358_v5 = vld [vmem:[#allocation8 + $0x68] sm:$0xff]  ;;  %v781_v7 = vld [vmem:[%s1780_s2] ss:$0 sm:$0xff]  ;;  %v360_v15 = vld [vmem:[#allocation8 + $0x78] sm:$0xff] }
  0x8e   :  { %1122 = vmatprep.subr.bf16.mxu0 %v1121_v26  ;;  %v1193_v6 = vpack.c.bf16 %v358_v5, %v357_v4  ;;  %v359_v14 = vld [vmem:[#allocation8 + $0x70] sm:$0xff]  ;;  %v445_v17 = vld [vmem:[#allocation10] sm:$0xff]  ;;  %v446_v18 = vld [vmem:[#allocation10 + $0x8] sm:$0xff] }
  0x8f   :  { %v1197_v16 = vpack.c.bf16 %v360_v15, %v359_v14  ;;  %v447_v19 = vld [vmem:[#allocation10 + $0x10] sm:$0xff]  ;;  %v1201_v20 = vpack.c.bf16 %v446_v18, %v445_v17  ;;  %v448_v21 = vld [vmem:[#allocation10 + $0x18] sm:$0xff]  ;;  %v449_v23 = vld [vmem:[#allocation10 + $0x20] sm:$0xff] }
  0x90   :  { %1152 = vmatpush3.bf16.msra.mxu1 %v1149_v29  ;;  %v1205_v22 = vpack.c.bf16 %v448_v21, %v447_v19  ;;  %v450_v24 = vld [vmem:[#allocation10 + $0x28] sm:$0xff]  ;;  %v452_v27 = vld [vmem:[#allocation10 + $0x38] sm:$0xff]  ;;  %v453_v29 = vld [vmem:[#allocation10 + $0x40] sm:$0xff] }
  0x91   :  { %1124 = vmatpush3.bf16.msra.mxu0 %v1121_v26  ;;  %1154 = vmatprep.subr.bf16.mxu1 %v1153_v35  ;;  %v1209_v25 = vpack.c.bf16 %v450_v24, %v449_v23  ;;  %v451_v26 = vld [vmem:[#allocation10 + $0x30] sm:$0xff]  ;;  %v454_v30 = vld [vmem:[#allocation10 + $0x48] sm:$0xff]  ;;  %v456_v33 = vld [vmem:[#allocation10 + $0x58] sm:$0xff] }
  0x92   :  { %1126 = vmatprep.subr.bf16.mxu0 %v1125_v32  ;;  %v1213_v28 = vpack.c.bf16 %v452_v27, %v451_v26  ;;  %v1217_v31 = vpack.c.bf16 %v454_v30, %v453_v29  ;;  %v458_v36 = vld [vmem:[#allocation10 + $0x68] sm:$0xff]  ;;  %v545_v48 = vld [vmem:[#allocation11] sm:$0xff]  ;;  %v547_v50 = vld [vmem:[#allocation11 + $0x10] sm:$0xff] }
  0x93   :  { %v548_v52 = vld [vmem:[#allocation11 + $0x18] sm:$0xff]  ;;  %v549_v54 = vld [vmem:[#allocation11 + $0x20] sm:$0xff]  ;;  %v551_v57 = vld [vmem:[#allocation11 + $0x30] sm:$0xff] }
  0x94   :  { %1156 = vmatpush3.bf16.msra.mxu1 %v1153_v35  ;;  %v457_v35 = vld [vmem:[#allocation10 + $0x60] sm:$0xff]  ;;  %v555_v63 = vld [vmem:[#allocation11 + $0x50] sm:$0xff]  ;;  %v646_v14 = vld [vmem:[#allocation13 + $0x8] sm:$0xff] }
  0x95   :  { %1128 = vmatpush3.bf16.msra.mxu0 %v1125_v32  ;;  %1158 = vmatprep.subr.bf16.mxu1 %v1157_v41  ;;  %v455_v32 = vld [vmem:[#allocation10 + $0x50] sm:$0xff]  ;;  %v1225_v37 = vpack.c.bf16 %v458_v36, %v457_v35  ;;  %v553_v60 = vld [vmem:[#allocation11 + $0x40] sm:$0xff]  ;;  %v648_v17 = vld [vmem:[#allocation13 + $0x18] sm:$0xff] }
  0x96   :  { %1130 = vmatprep.subr.bf16.mxu0 %v1129_v38  ;;  %v1221_v34 = vpack.c.bf16 %v456_v33, %v455_v32  ;;  %v557_v2 = vld [vmem:[#allocation11 + $0x60] sm:$0xff]  ;;  %v783_v5 = vld [vmem:[%s1784_s6] ss:$0 sm:$0xff]  ;;  %v652_v23 = vld [vmem:[#allocation13 + $0x38] sm:$0xff] }
  0x97   :  { %v647_v15 = vld [vmem:[#allocation13 + $0x10] sm:$0xff]  ;;  %v649_v19 = vld [vmem:[#allocation13 + $0x20] sm:$0xff]  ;;  %v654_v26 = vld [vmem:[#allocation13 + $0x48] sm:$0xff] }
  0x98   :  { %1160 = vmatpush3.bf16.msra.mxu1 %v1157_v41  ;;  %v1269_v18 = vpack.c.bf16 %v648_v17, %v647_v15  ;;  %v656_v29 = vld [vmem:[#allocation13 + $0x58] sm:$0xff]  ;;  %v658_v32 = vld [vmem:[#allocation13 + $0x68] sm:$0xff] }
  0x99   :  { %1132 = vmatpush3.bf16.msra.mxu0 %v1129_v38  ;;  %1162 = vmatprep.subr.bf16.mxu1 %v1161_v45  ;;  %v782_v38 = vld [vmem:[%s1782_s4] ss:$0 sm:$0xff] }
  0x9a   :  { %1134 = vmatprep.subr.bf16.mxu0 %v1133_v44 }
  0x9c   :  { %1164 = vmatpush3.bf16.msra.mxu1 %v1161_v45  ;;  %v459_v45 = vld [vmem:[#allocation10 + $0x70] sm:$0xff] }
  0x9d   :  { %1136 = vmatpush3.bf16.msra.mxu0 %v1133_v44  ;;  %1166 = vmatprep.subr.bf16.mxu1 %v1165_v49 }
  0x9e   :  { %1170 = vmatprep.subr.bf16.mxu0 %v1169_v53 }
  0xa0   :  { %928 = vmatmul.mubr.f32.vlgmr.msra.gmra.mrb[0].mxu0 %v144_v46  ;;  %1168 = vmatpush3.bf16.msra.mxu1 %v1165_v49  ;;  %v460_v46 = vld [vmem:[#allocation10 + $0x78] sm:$0xff]  ;;  %v546_v49 = vld [vmem:[#allocation11 + $0x8] sm:$0xff] }
  0xa1   :  { %1172 = vmatpush3.bf16.msra.mxu0 %v1169_v53  ;;  %1202 = vmatprep.subr.bf16.mxu1 %v1201_v20  ;;  %v1229_v47 = vpack.c.bf16 %v460_v46, %v459_v45  ;;  %v1233_v51 = vpack.c.bf16 %v546_v49, %v545_v48  ;;  %v1237_v53 = vpack.c.bf16 %v548_v52, %v547_v50 }
  0xa2   :  { %1174 = vmatprep.subr.bf16.mxu0 %v1173_v55 }
  0xa5   :  { %1176 = vmatpush3.bf16.msra.mxu0 %v1173_v55  ;;  %v550_v55 = vld [vmem:[#allocation11 + $0x28] sm:$0xff] }
  0xa6   :  { %1178 = vmatprep.subr.bf16.mxu0 %v1177_v58  ;;  %v1241_v56 = vpack.c.bf16 %v550_v55, %v549_v54 }
  0xa9   :  { %1180 = vmatpush3.bf16.msra.mxu0 %v1177_v58  ;;  %v552_v58 = vld [vmem:[#allocation11 + $0x38] sm:$0xff] }
  0xaa   :  { %1182 = vmatprep.subr.bf16.mxu0 %v1181_v61  ;;  %v1245_v59 = vpack.c.bf16 %v552_v58, %v551_v57 }
  0xad   :  { %1184 = vmatpush3.bf16.msra.mxu0 %v1181_v61  ;;  %v554_v61 = vld [vmem:[#allocation11 + $0x48] sm:$0xff] }
  0xae   :  { %1186 = vmatprep.subr.bf16.mxu0 %v1185_v0  ;;  %v1249_v62 = vpack.c.bf16 %v554_v61, %v553_v60 }
  0xb1   :  { %1188 = vmatpush3.bf16.msra.mxu0 %v1185_v0  ;;  %v556_v0 = vld [vmem:[#allocation11 + $0x58] sm:$0xff] }
  0xb2   :  { %1190 = vmatprep.subr.bf16.mxu0 %v1189_v3  ;;  %v1253_v1 = vpack.c.bf16 %v556_v0, %v555_v63 }
  0xb5   :  { %1192 = vmatpush3.bf16.msra.mxu0 %v1189_v3  ;;  %v558_v3 = vld [vmem:[#allocation11 + $0x68] sm:$0xff] }
  0xb6   :  { %1194 = vmatprep.subr.bf16.mxu0 %v1193_v6  ;;  %v1257_v4 = vpack.c.bf16 %v558_v3, %v557_v2 }
  0xb9   :  { %1196 = vmatpush3.bf16.msra.mxu0 %v1193_v6 }
  0xba   :  { %1198 = vmatprep.subr.bf16.mxu0 %v1197_v16 }
  0xbd   :  { %1200 = vmatpush3.bf16.msra.mxu0 %v1197_v16 }
  0xbe   :  { %1234 = vmatprep.subr.bf16.mxu0 %v1233_v51 }
 0x173   :  { %v929_v8 = vpop.f32.mrb[0].mxu0 }
 0x174   :  { %v240_v9 = vadd.f32 %v929_v8, %v781_v7  ;;  %v234_v10 = vpop.f32.mrb[1].mxu0 }
 0x175   :  { %v235_v11 = vadd.f32 %v781_v7, %v234_v10  ;;  %v559_v10 = vld [vmem:[#allocation11 + $0x70] sm:$0xff] }
 0x176   :  { %v244_v13 = vmax.f32 %v240_v9, 0.0 }
 0x177   :  { %v243_v12 = vmax.f32 %v235_v11, 0.0  ;;  %v560_v11 = vld [vmem:[#allocation11 + $0x78] sm:$0xff] }
 0x179   :  { %962 = vmatprep.mubr.f32.mxu1 %v243_v12  ;;  %v1261_v12 = vpack.c.bf16 %v560_v11, %v559_v10 }
 0x17a   :  { %963 = vmatmul.mubr.f32.vlgmr.msra.gmra.mrb[0].mxu1 %v244_v13  ;;  %v645_v13 = vld [vmem:[#allocation13] sm:$0xff] }
 0x17b   :  { %1204 = vmatpush3.bf16.msra.mxu1 %v1201_v20  ;;  %v1265_v16 = vpack.c.bf16 %v646_v14, %v645_v13  ;;  %v650_v20 = vld [vmem:[#allocation13 + $0x28] sm:$0xff] }
 0x17c   :  { %1206 = vmatprep.subr.bf16.mxu1 %v1205_v22  ;;  %v1273_v21 = vpack.c.bf16 %v650_v20, %v649_v19 }
 0x17f   :  { %1208 = vmatpush3.bf16.msra.mxu1 %v1205_v22  ;;  %v651_v22 = vld [vmem:[#allocation13 + $0x30] sm:$0xff] }
 0x180   :  { %1210 = vmatprep.subr.bf16.mxu1 %v1209_v25  ;;  %v1277_v24 = vpack.c.bf16 %v652_v23, %v651_v22 }
 0x183   :  { %1212 = vmatpush3.bf16.msra.mxu1 %v1209_v25  ;;  %v653_v25 = vld [vmem:[#allocation13 + $0x40] sm:$0xff] }
 0x184   :  { %1214 = vmatprep.subr.bf16.mxu1 %v1213_v28  ;;  %v1281_v27 = vpack.c.bf16 %v654_v26, %v653_v25 }
 0x187   :  { %1216 = vmatpush3.bf16.msra.mxu1 %v1213_v28  ;;  %v655_v28 = vld [vmem:[#allocation13 + $0x50] sm:$0xff] }
 0x188   :  { %1218 = vmatprep.subr.bf16.mxu1 %v1217_v31  ;;  %v1285_v30 = vpack.c.bf16 %v656_v29, %v655_v28 }
 0x18b   :  { %1220 = vmatpush3.bf16.msra.mxu1 %v1217_v31  ;;  %v657_v31 = vld [vmem:[#allocation13 + $0x60] sm:$0xff] }
 0x18c   :  { %1222 = vmatprep.subr.bf16.mxu1 %v1221_v34  ;;  %v1289_v33 = vpack.c.bf16 %v658_v32, %v657_v31 }
 0x18f   :  { %1224 = vmatpush3.bf16.msra.mxu1 %v1221_v34  ;;  %v784_v34 = vld [vmem:[%s1786_s8] ss:$0 sm:$0xff]  ;;  %s1527_s8 = smov [#allocation15]  }
 0x190   :  { %1226 = vmatprep.subr.bf16.mxu1 %v1225_v37  ;;  %s762_s3 = sshll.u32 %s1527_s8, 4  ;;  %s763_s3 = int_to_ptr.vmem [resolvable:$true] %s762_s3 }
 0x191   :  { %s1462_s20 = scalar_lea.vmem %s763_s3, 256  ;;  %p1467_p1 = scmp.lt.s32.totalorder %s763_s3, %s763_s3 }
 0x192   :  { %p1463_p0 = scmp.ne.s32.totalorder %s763_s3, %s1462_s20  ;;  %p1468_p2 = scmp.lt.s32.totalorder %s1462_s20, %s1462_s20 }
 0x193   :  { %1228 = vmatpush3.bf16.msra.mxu1 %v1225_v37 }
 0x194   :  { %1230 = vmatprep.subr.bf16.mxu1 %v1229_v47  ;;  %p1469_p3 = por %p1468_p2, %p1467_p1 }
 0x196   :  { %p1470_p4 = pnand %p1469_p3, %p1463_p0 }
 0x197   :  { %1232 = vmatpush3.bf16.msra.mxu1 %v1229_v47 }
 0x198   :  { %1266 = vmatprep.subr.bf16.mxu1 %v1265_v16 }
 0x24d   :  { %v964_v39 = vpop.f32.mrb[0].mxu1 }
 0x24e   :  { %v340_v40 = vadd.f32 %v964_v39, %v782_v38  ;;  %v334_v41 = vpop.f32.mrb[1].mxu1 }
 0x24f   :  { %v335_v42 = vadd.f32 %v782_v38, %v334_v41  ;;  %v659_v41 = vld [vmem:[#allocation13 + $0x70] sm:$0xff] }
 0x250   :  { %v344_v44 = vmax.f32 %v340_v40, 0.0 }
 0x251   :  { %v343_v43 = vmax.f32 %v335_v42, 0.0  ;;  %v660_v42 = vld [vmem:[#allocation13 + $0x78] sm:$0xff] }
 0x253   :  { %997 = vmatprep.mubr.f32.mxu0 %v343_v43  ;;  %v1293_v43 = vpack.c.bf16 %v660_v42, %v659_v41 }
 0x254   :  { %998 = vmatmul.mubr.f32.vlgmr.msra.gmra.mrb[2].mxu0 %v344_v44  ;;  %v785_v44 = vld [vmem:[%s1788_s10] ss:$0 sm:$0xff] }
 0x255   :  { %1236 = vmatpush3.bf16.msra.mxu0 %v1233_v51 }
 0x256   :  { %1238 = vmatprep.subr.bf16.mxu0 %v1237_v53 }
 0x259   :  { %1240 = vmatpush3.bf16.msra.mxu0 %v1237_v53 }
 0x25a   :  { %1242 = vmatprep.subr.bf16.mxu0 %v1241_v56 }
 0x25d   :  { %1244 = vmatpush3.bf16.msra.mxu0 %v1241_v56 }
 0x25e   :  { %1246 = vmatprep.subr.bf16.mxu0 %v1245_v59 }
 0x261   :  { %1248 = vmatpush3.bf16.msra.mxu0 %v1245_v59 }
 0x262   :  { %1250 = vmatprep.subr.bf16.mxu0 %v1249_v62 }
 0x265   :  { %1252 = vmatpush3.bf16.msra.mxu0 %v1249_v62 }
 0x266   :  { %1254 = vmatprep.subr.bf16.mxu0 %v1253_v1 }
 0x269   :  { %1256 = vmatpush3.bf16.msra.mxu0 %v1253_v1 }
 0x26a   :  { %1258 = vmatprep.subr.bf16.mxu0 %v1257_v4 }
 0x26d   :  { %1260 = vmatpush3.bf16.msra.mxu0 %v1257_v4 }
 0x26e   :  { %1262 = vmatprep.subr.bf16.mxu0 %v1261_v12 }
 0x271   :  { %1264 = vmatpush3.bf16.msra.mxu0 %v1261_v12 }
 0x327   :  { %v999_v6 = vpop.f32.mrb[2].mxu0 }
 0x328   :  { %v440_v7 = vadd.f32 %v999_v6, %v783_v5  ;;  %v434_v8 = vpop.f32.mrb[3].mxu0 }
 0x329   :  { %v435_v9 = vadd.f32 %v783_v5, %v434_v8 }
 0x32a   :  { %444 = vst [vmem:[#allocation15 + $0x8] sm:$0xff] %v440_v7 }
 0x32b   :  { %443 = vst [vmem:[#allocation15] sm:$0xff] %v435_v9  ;;  %1032 = vmatprep.mubr.f32.mxu1 %v435_v9 }
 0x32c   :  { %1033 = vmatmul.mubr.f32.vlgmr.msra.gmra.mrb[2].mxu1 %v440_v7 }
 0x32d   :  { %1268 = vmatpush3.bf16.msra.mxu1 %v1265_v16 }
 0x32e   :  { %1270 = vmatprep.subr.bf16.mxu1 %v1269_v18 }
 0x331   :  { %1272 = vmatpush3.bf16.msra.mxu1 %v1269_v18 }
 0x332   :  { %1274 = vmatprep.subr.bf16.mxu1 %v1273_v21 }
 0x335   :  { %1276 = vmatpush3.bf16.msra.mxu1 %v1273_v21 }
 0x336   :  { %1278 = vmatprep.subr.bf16.mxu1 %v1277_v24 }
 0x339   :  { %1280 = vmatpush3.bf16.msra.mxu1 %v1277_v24 }
 0x33a   :  { %1282 = vmatprep.subr.bf16.mxu1 %v1281_v27 }
 0x33d   :  { %1284 = vmatpush3.bf16.msra.mxu1 %v1281_v27 }
 0x33e   :  { %1286 = vmatprep.subr.bf16.mxu1 %v1285_v30 }
 0x341   :  { %1288 = vmatpush3.bf16.msra.mxu1 %v1285_v30 }
 0x342   :  { %1290 = vmatprep.subr.bf16.mxu1 %v1289_v33 }
 0x345   :  { %1292 = vmatpush3.bf16.msra.mxu1 %v1289_v33 }
 0x346   :  { %1294 = vmatprep.subr.bf16.mxu1 %v1293_v43 }
 0x349   :  { %1296 = vmatpush3.bf16.msra.mxu1 %v1293_v43 }
 0x3ff   :  { %v1034_v35 = vpop.f32.mrb[2].mxu1 }
 0x400   :  { %v540_v36 = vadd.f32 %v1034_v35, %v784_v34  ;;  %v534_v37 = vpop.f32.mrb[3].mxu1 }
 0x401   :  { %v535_v38 = vadd.f32 %v784_v34, %v534_v37 }
 0x402   :  { %v544_v40 = vmax.f32 %v540_v36, 0.0 }
 0x403   :  { %v543_v39 = vmax.f32 %v535_v38, 0.0 }
 0x405   :  { %1067 = vmatprep.mubr.f32.mxu0 %v543_v39 }
 0x406   :  { %1068 = vmatmul.mubr.f32.vlgmr.msra.gmra.mrb[4].mxu0 %v544_v40 }
 0x4d9   :  { %v1069_v45 = vpop.f32.mrb[4].mxu0 }
 0x4da   :  { %v640_v46 = vadd.f32 %v1069_v45, %v785_v44  ;;  %v634_v47 = vpop.f32.mrb[5].mxu0 }
 0x4db   :  { %v635_v48 = vadd.f32 %v785_v44, %v634_v47 }
 0x4dc   :  { %v644_v50 = vmax.f32 %v640_v46, 0.0 }
 0x4dd   :  { %v643_v49 = vmax.f32 %v635_v48, 0.0 }
 0x4df   :  { %1102 = vmatprep.mubr.f32.mxu1 %v643_v49 }
 0x4e0   :  { %1103 = vmatmul.mubr.f32.vlgmr.msra.gmra.mrb[4].mxu1 %v644_v50 }
 0x4e1   :  { %1473 = shalt.err (!%p1470_p4)
}
 0x4e2   :  { %s1474_s30 = scalar_lea.hbm %s1792_s14, 256 }
 0x4e3   :  { %p1475_p5 = scmp.ne.s32.totalorder %s1792_s14, %s1474_s30  ;;  %p1478_p6 = scmp.lt.u32.totalorder %s1474_s30, %s1792_s14 }
 0x4e5   :  { %p1480_p7 = pnand %p1478_p6, %p1475_p5 }
 0x4e7   :  { %1483 = shalt.err (!%p1480_p7)
}
 0x4e8   :  { %768 = dma.vmem_to_hbm [thread:$0]  %s763_s3, 256, %s1792_s14, [#allocation16], %s1520_s25, %s1520_s25, %s1521_s26  }
 0x4e9   :  { %v786_v51 = vld [vmem:[%s1790_s12] ss:$0 sm:$0xff]  ;;  %s1528_s7 = smov [#allocation14]  }
 0x4ea   :  { %s750_s5 = sshll.u32 %s1528_s7, 4  ;;  %s751_s5 = int_to_ptr.vmem [resolvable:$true] %s750_s5 }
 0x4eb   :  { %s1484_s11 = scalar_lea.vmem %s751_s5, 256  ;;  %p1489_p9 = scmp.lt.s32.totalorder %s751_s5, %s751_s5 }
 0x4ec   :  { %p1485_p8 = scmp.ne.s32.totalorder %s751_s5, %s1484_s11  ;;  %p1490_p10 = scmp.lt.s32.totalorder %s1484_s11, %s1484_s11 }
 0x4ee   :  { %p1491_p11 = por %p1490_p10, %p1489_p9 }
 0x4f0   :  { %p1492_p12 = pnand %p1491_p11, %p1485_p8 }
 0x5b3   :  { %v1104_v52 = vpop.f32.mrb[4].mxu1 }
 0x5b4   :  { %v740_v53 = vadd.f32 %v1104_v52, %v786_v51  ;;  %v734_v54 = vpop.f32.mrb[5].mxu1 }
 0x5b5   :  { %v735_v55 = vadd.f32 %v786_v51, %v734_v54 }
 0x5b6   :  { %744 = vst [vmem:[#allocation14 + $0x8] sm:$0xff] %v740_v53 }
 0x5b7   :  { %743 = vst [vmem:[#allocation14] sm:$0xff] %v735_v55 }
 0x5b8   :  { %1495 = shalt.err (!%p1492_p12)
}
 0x5b9   :  { %s1496_s12 = scalar_lea.hbm %s1791_s13, 256 }
 0x5ba   :  { %p1497_p13 = scmp.ne.s32.totalorder %s1791_s13, %s1496_s12  ;;  %p1500_p0 = scmp.lt.u32.totalorder %s1496_s12, %s1791_s13 }
 0x5bc   :  { %p1502_p1 = pnand %p1500_p0, %p1497_p13 }
 0x5be   :  { %1505 = shalt.err (!%p1502_p1)
}
 0x5bf   :  { %756 = dma.vmem_to_hbm [thread:$0]  %s751_s5, 256, %s1791_s13, [#allocation4], %s1520_s25, %s1520_s25, %s1521_s26  }
 0x5c0   :  { %1514 = dma.done.wait [#allocation4], 256  }
 0x5c1   :  { %1515 = vsyncadd [#allocation4], 4294967040 }
 0x5c2   :  { %1516 = dma.done.wait [#allocation16], 256  }
 0x5c3   :  { %1517 = vsyncadd [#allocation16], 4294967040 }
 0x5c4   :  { %775 = vsyncpa [#allocation3], 1 }
 0x5c5   :  { %776 = vsyncpa [#allocation6], 1 }
 0x5c6   :  { %777 = vsyncpa [#allocation9], 1 }
 0x5c7   :  { %778 = vsyncpa [#allocation12], 1 }
 0x5c8   :  { %779 = vsyncpa [#allocation4], 1 }
 0x5c9   :  { %780 = vsyncpa [#allocation16], 1 }

// kernel: tpu_custom_call.1
= control target key start
LH: loop header
LB: loop body
LE: loop exit
PB: predicated region body
PF: predicated region fallthrough
CT: control target
= control target key end

     0   :  { %20 = vsyncpa [#allocation3], 0  ;;  %s1778_s0 = inlined_call_operand.hbm [shape: f32[16,128], index: 0, kind: input, shape index: {}]   ;;  %s1779_s1 = inlined_call_operand.hbm [shape: f32[128,128], index: 1, kind: input, shape index: {}]   ;;  %s1780_s2 = inlined_call_operand.vmem [shape: f32[1,128], index: 2, kind: input, shape index: {}]   ;;  %s1781_s3 = inlined_call_operand.hbm [shape: f32[128,128], index: 3, kind: input, shape index: {}]   ;;  %s1782_s4 = inlined_call_operand.vmem [shape: f32[1,128], index: 4, kind: input, shape index: {}]   ;;  %s1783_s5 = inlined_call_operand.hbm [shape: f32[128,128], index: 5, kind: input, shape index: {}]   ;;  %s1784_s6 = inlined_call_operand.vmem [shape: f32[1,128], index: 6, kind: input, shape index: {}]   ;;  %s1785_s7 = inlined_call_operand.hbm [shape: f32[128,128], index: 7, kind: input, shape index: {}]   ;;  %s1786_s8 = inlined_call_operand.vmem [shape: f32[1,128], index: 8, kind: input, shape index: {}]   ;;  %s1787_s9 = inlined_call_operand.hbm [shape: f32[128,128], index: 9, kind: input, shape index: {}]   ;;  %s1788_s10 = inlined_call_operand.vmem [shape: f32[1,128], index: 10, kind: input, shape index: {}]   ;;  %s1789_s11 = inlined_call_operand.hbm [shape: f32[128,128], index: 11, kind: input, shape index: {}]   ;;  %s1790_s12 = inlined_call_operand.vmem [shape: f32[1,128], index: 12, kind: input, shape index: {}]   ;;  %s1791_s13 = inlined_call_operand.hbm [shape: f32[16,128], index: 13, kind: output, shape index: {0}]   ;;  %s1792_s14 = inlined_call_operand.hbm [shape: f32[16,128], index: 14, kind: output, shape index: {1}]  }
   0x1   :  { %21 = vsyncpa [#allocation6], 0 }
   0x2   :  { %22 = vsyncpa [#allocation9], 0 }
   0x3   :  { %23 = vsyncpa [#allocation12], 0 }
   0x4   :  { %24 = vsyncpa [#allocation4], 0 }
   0x5   :  { %25 = vsyncpa [#allocation16], 0  ;;  %s1518_s29 = smov [#allocation5]   ;;  %s1519_s15 = smov [#allocation8]  }
   0x6   :  { %s43_s30 = sshll.u32 %s1518_s29, 4  ;;  %s71_s16 = sshll.u32 %s1519_s15, 4  ;;  %s44_s30 = int_to_ptr.vmem [resolvable:$true] %s43_s30  ;;  %s1604_s16 = int_to_ptr.vmem [resolvable:$true] %s71_s16 }
   0x7   :  { %s1308_s19 = scalar_lea.hbm %s1779_s1, 2048 }
   0x8   :  { %p1309_p0 = scmp.ne.s32.totalorder %s1779_s1, %s1308_s19  ;;  %p1312_p1 = scmp.lt.u32.totalorder %s1308_s19, %s1779_s1 }
   0xa   :  { %p1314_p2 = pnand %p1312_p1, %p1309_p0 }
   0xc   :  { %1317 = shalt.err (!%p1314_p2)
}
   0xd   :  { %s1318_s24 = scalar_lea.vmem %s44_s30, 2048  ;;  %p1323_p4 = scmp.lt.s32.totalorder %s44_s30, %s44_s30 }
   0xe   :  { %p1319_p3 = scmp.ne.s32.totalorder %s44_s30, %s1318_s24  ;;  %p1324_p5 = scmp.lt.s32.totalorder %s1318_s24, %s1318_s24 }
  0x10   :  { %p1325_p6 = por %p1324_p5, %p1323_p4 }
  0x12   :  { %p1326_p7 = pnand %p1325_p6, %p1319_p3 }
  0x14   :  { %1329 = shalt.err (!%p1326_p7)
}
  0x15   :  { %s1520_s25 = smov 128   ;;  %s1521_s26 = smov 8  }
  0x16   :  { %49 = dma.hbm_to_vmem [thread:$0]  %s1779_s1, 2048, %s44_s30, [#allocation6], %s1520_s25, %s1520_s25, %s1521_s26  }
  0x17   :  { %s1330_s17 = scalar_lea.hbm %s1783_s5, 2048 }
  0x18   :  { %p1331_p8 = scmp.ne.s32.totalorder %s1783_s5, %s1330_s17  ;;  %p1334_p9 = scmp.lt.u32.totalorder %s1330_s17, %s1783_s5 }
  0x1a   :  { %p1336_p10 = pnand %p1334_p9, %p1331_p8 }
  0x1c   :  { %1339 = shalt.err (!%p1336_p10)
}
  0x1d   :  { %s1340_s22 = scalar_lea.vmem %s1604_s16, 2048  ;;  %p1345_p12 = scmp.lt.s32.totalorder %s1604_s16, %s1604_s16 }
  0x1e   :  { %p1341_p11 = scmp.ne.s32.totalorder %s1604_s16, %s1340_s22  ;;  %p1346_p13 = scmp.lt.s32.totalorder %s1340_s22, %s1340_s22 }
  0x20   :  { %p1347_p0 = por %p1346_p13, %p1345_p12 }
  0x22   :  { %p1348_p1 = pnand %p1347_p0, %p1341_p11 }
  0x24   :  { %1351 = shalt.err (!%p1348_p1)
}
  0x25   :  { %77 = dma.hbm_to_vmem [thread:$0]  %s1783_s5, 2048, %s1604_s16, [#allocation9], %s1520_s25, %s1520_s25, %s1521_s26  }
  0x26   :  { %s1522_s23 = smov [#allocation11]   ;;  %s1523_s27 = smov [#allocation2]  }
  0x27   :  { %s99_s24 = sshll.u32 %s1522_s23, 4  ;;  %s31_s28 = sshll.u32 %s1523_s27, 4  ;;  %s100_s24 = int_to_ptr.vmem [resolvable:$true] %s99_s24  ;;  %s1641_s28 = int_to_ptr.vmem [resolvable:$true] %s31_s28 }
  0x28   :  { %s1352_s17 = scalar_lea.hbm %s1787_s9, 2048 }
  0x29   :  { %p1353_p2 = scmp.ne.s32.totalorder %s1787_s9, %s1352_s17  ;;  %p1356_p3 = scmp.lt.u32.totalorder %s1352_s17, %s1787_s9 }
  0x2b   :  { %p1358_p4 = pnand %p1356_p3, %p1353_p2 }
  0x2d   :  { %1361 = shalt.err (!%p1358_p4)
}
  0x2e   :  { %s1362_s5 = scalar_lea.vmem %s100_s24, 2048  ;;  %p1367_p6 = scmp.lt.s32.totalorder %s100_s24, %s100_s24 }
  0x2f   :  { %p1363_p5 = scmp.ne.s32.totalorder %s100_s24, %s1362_s5  ;;  %p1368_p7 = scmp.lt.s32.totalorder %s1362_s5, %s1362_s5 }
  0x31   :  { %p1369_p8 = por %p1368_p7, %p1367_p6 }
  0x33   :  { %p1370_p9 = pnand %p1369_p8, %p1363_p5 }
  0x35   :  { %1373 = shalt.err (!%p1370_p9)
}
  0x36   :  { %105 = dma.hbm_to_vmem [thread:$0]  %s1787_s9, 2048, %s100_s24, [#allocation12], %s1520_s25, %s1520_s25, %s1521_s26  }
  0x37   :  { %s1374_s23 = scalar_lea.hbm %s1778_s0, 256 }
  0x38   :  { %p1375_p10 = scmp.ne.s32.totalorder %s1778_s0, %s1374_s23  ;;  %p1378_p11 = scmp.lt.u32.totalorder %s1374_s23, %s1778_s0 }
  0x3a   :  { %p1380_p12 = pnand %p1378_p11, %p1375_p10 }
  0x3c   :  { %1383 = shalt.err (!%p1380_p12)
}
  0x3d   :  { %s1384_s18 = scalar_lea.vmem %s1641_s28, 256  ;;  %p1389_p0 = scmp.lt.s32.totalorder %s1641_s28, %s1641_s28 }
  0x3e   :  { %p1385_p13 = scmp.ne.s32.totalorder %s1641_s28, %s1384_s18  ;;  %p1390_p1 = scmp.lt.s32.totalorder %s1384_s18, %s1384_s18 }
  0x40   :  { %p1391_p2 = por %p1390_p1, %p1389_p0 }
  0x42   :  { %p1392_p3 = pnand %p1391_p2, %p1385_p13 }
  0x44   :  { %1395 = shalt.err (!%p1392_p3)
}
  0x45   :  { %37 = dma.hbm_to_vmem [thread:$0]  %s1778_s0, 256, %s1641_s28, [#allocation3], %s1520_s25, %s1520_s25, %s1521_s26  }
  0x46   :  { %s1524_s19 = smov [#allocation7]   ;;  %s1525_s21 = smov [#allocation10]  }
  0x47   :  { %s57_s20 = sshll.u32 %s1524_s19, 4  ;;  %s85_s5 = sshll.u32 %s1525_s21, 4  ;;  %s58_s20 = int_to_ptr.vmem [resolvable:$true] %s57_s20  ;;  %s1678_s5 = int_to_ptr.vmem [resolvable:$true] %s85_s5 }
  0x48   :  { %s1396_s1 = scalar_lea.hbm %s1781_s3, 2048 }
  0x49   :  { %p1397_p4 = scmp.ne.s32.totalorder %s1781_s3, %s1396_s1  ;;  %p1400_p5 = scmp.lt.u32.totalorder %s1396_s1, %s1781_s3 }
  0x4b   :  { %p1402_p6 = pnand %p1400_p5, %p1397_p4 }
  0x4d   :  { %1405 = shalt.err (!%p1402_p6)
}
  0x4e   :  { %s1406_s0 = scalar_lea.vmem %s58_s20, 2048  ;;  %p1411_p8 = scmp.lt.s32.totalorder %s58_s20, %s58_s20 }
  0x4f   :  { %p1407_p7 = scmp.ne.s32.totalorder %s58_s20, %s1406_s0  ;;  %p1412_p9 = scmp.lt.s32.totalorder %s1406_s0, %s1406_s0 }
  0x51   :  { %p1413_p10 = por %p1412_p9, %p1411_p8 }
  0x53   :  { %p1414_p11 = pnand %p1413_p10, %p1407_p7 }
  0x55   :  { %1417 = shalt.err (!%p1414_p11)
}
  0x56   :  { %63 = dma.hbm_to_vmem [thread:$0]  %s1781_s3, 2048, %s58_s20, [#allocation6], %s1520_s25, %s1520_s25, %s1521_s26  }
  0x57   :  { %s1418_s9 = scalar_lea.hbm %s1785_s7, 2048 }
  0x58   :  { %p1419_p12 = scmp.ne.s32.totalorder %s1785_s7, %s1418_s9  ;;  %p1422_p13 = scmp.lt.u32.totalorder %s1418_s9, %s1785_s7 }
  0x5a   :  { %p1424_p0 = pnand %p1422_p13, %p1419_p12 }
  0x5c   :  { %1427 = shalt.err (!%p1424_p0)
}
  0x5d   :  { %s1428_s22 = scalar_lea.vmem %s1678_s5, 2048  ;;  %p1433_p2 = scmp.lt.s32.totalorder %s1678_s5, %s1678_s5 }
  0x5e   :  { %p1429_p1 = scmp.ne.s32.totalorder %s1678_s5, %s1428_s22  ;;  %p1434_p3 = scmp.lt.s32.totalorder %s1428_s22, %s1428_s22 }
  0x60   :  { %p1435_p4 = por %p1434_p3, %p1433_p2 }
  0x62   :  { %p1436_p5 = pnand %p1435_p4, %p1429_p1 }
  0x64   :  { %1439 = shalt.err (!%p1436_p5)
}
  0x65   :  { %91 = dma.hbm_to_vmem [thread:$0]  %s1785_s7, 2048, %s1678_s5, [#allocation9], %s1520_s25, %s1520_s25, %s1521_s26  }
  0x66   :  { %s1526_s1 = smov [#allocation13]   ;;  %s1440_s29 = scalar_lea.hbm %s1789_s11, 2048 }
  0x67   :  { %s113_s30 = sshll.u32 %s1526_s1, 4  ;;  %p1441_p6 = scmp.ne.s32.totalorder %s1789_s11, %s1440_s29  ;;  %s114_s30 = int_to_ptr.vmem [resolvable:$true] %s113_s30 }
  0x68   :  { %p1444_p7 = scmp.lt.u32.totalorder %s1440_s29, %s1789_s11 }
  0x6a   :  { %p1446_p8 = pnand %p1444_p7, %p1441_p6 }
  0x6c   :  { %1449 = shalt.err (!%p1446_p8)
}
  0x6d   :  { %s1450_s18 = scalar_lea.vmem %s114_s30, 2048  ;;  %p1455_p10 = scmp.lt.s32.totalorder %s114_s30, %s114_s30 }
  0x6e   :  { %p1451_p9 = scmp.ne.s32.totalorder %s114_s30, %s1450_s18  ;;  %p1456_p11 = scmp.lt.s32.totalorder %s1450_s18, %s1450_s18 }
  0x70   :  { %p1457_p12 = por %p1456_p11, %p1455_p10 }
  0x72   :  { %p1458_p13 = pnand %p1457_p12, %p1451_p9 }
  0x74   :  { %1461 = shalt.err (!%p1458_p13)
}
  0x75   :  { %119 = dma.hbm_to_vmem [thread:$0]  %s1789_s11, 2048, %s114_s30, [#allocation12], %s1520_s25, %s1520_s25, %s1521_s26  }
  0x76   :  { %1506 = dma.done.wait [#allocation3], 256  }
  0x77   :  { %1507 = vsyncadd [#allocation3], 4294967040 }
  0x78   :  { %1508 = dma.done.wait [#allocation6], 4096  }
  0x79   :  { %1509 = vsyncadd [#allocation6], 4294963200 }
  0x7a   :  { %1510 = dma.done.wait [#allocation9], 4096  }
  0x7b   :  { %1511 = vsyncadd [#allocation9], 4294963200 }
  0x7c   :  { %1512 = dma.done.wait [#allocation12], 4096  }
  0x7d   :  { %1513 = vsyncadd [#allocation12], 4294963200  ;;  %v145_v0 = vld [vmem:[#allocation5] sm:$0xff]  ;;  %v146_v1 = vld [vmem:[#allocation5 + $0x8] sm:$0xff] }
  0x7e   :  { %v147_v2 = vld [vmem:[#allocation5 + $0x10] sm:$0xff]  ;;  %v1105_v3 = vpack.c.bf16 %v146_v1, %v145_v0  ;;  %v148_v4 = vld [vmem:[#allocation5 + $0x18] sm:$0xff]  ;;  %v149_v6 = vld [vmem:[#allocation5 + $0x20] sm:$0xff] }
  0x7f   :  { %v1109_v5 = vpack.c.bf16 %v148_v4, %v147_v2  ;;  %v150_v7 = vld [vmem:[#allocation5 + $0x28] sm:$0xff]  ;;  %v151_v9 = vld [vmem:[#allocation5 + $0x30] sm:$0xff]  ;;  %v152_v10 = vld [vmem:[#allocation5 + $0x38] sm:$0xff] }
  0x80   :  { %1106 = vmatprep.subr.bf16.mxu0 %v1105_v3  ;;  %v1113_v8 = vpack.c.bf16 %v150_v7, %v149_v6  ;;  %v143_v11 = vld [vmem:[#allocation2] sm:$0xff]  ;;  %v245_v12 = vld [vmem:[#allocation7] sm:$0xff]  ;;  %v246_v13 = vld [vmem:[#allocation7 + $0x8] sm:$0xff]  ;;  %v1117_v20 = vpack.c.bf16 %v152_v10, %v151_v9 }
  0x81   :  { %1108 = vmatpush3.bf16.msra.mxu0 %v1105_v3  ;;  %927 = vmatprep.mubr.f32.mxu0 %v143_v11  ;;  %v247_v14 = vld [vmem:[#allocation7 + $0x10] sm:$0xff]  ;;  %v1137_v15 = vpack.c.bf16 %v246_v13, %v245_v12  ;;  %v248_v16 = vld [vmem:[#allocation7 + $0x18] sm:$0xff]  ;;  %v249_v18 = vld [vmem:[#allocation7 + $0x20] sm:$0xff] }
  0x82   :  { %1110 = vmatprep.subr.bf16.mxu0 %v1109_v5  ;;  %v1141_v17 = vpack.c.bf16 %v248_v16, %v247_v14  ;;  %v250_v19 = vld [vmem:[#allocation7 + $0x28] sm:$0xff]  ;;  %v153_v21 = vld [vmem:[#allocation5 + $0x40] sm:$0xff]  ;;  %v251_v24 = vld [vmem:[#allocation7 + $0x30] sm:$0xff] }
  0x83   :  { %1138 = vmatprep.subr.bf16.mxu1 %v1137_v15  ;;  %v154_v22 = vld [vmem:[#allocation5 + $0x48] sm:$0xff]  ;;  %v1145_v23 = vpack.c.bf16 %v250_v19, %v249_v18  ;;  %v252_v25 = vld [vmem:[#allocation7 + $0x38] sm:$0xff]  ;;  %v155_v27 = vld [vmem:[#allocation5 + $0x50] sm:$0xff] }
  0x84   :  { %1140 = vmatpush3.bf16.msra.mxu1 %v1137_v15  ;;  %v1121_v26 = vpack.c.bf16 %v154_v22, %v153_v21  ;;  %v156_v28 = vld [vmem:[#allocation5 + $0x58] sm:$0xff]  ;;  %v1149_v29 = vpack.c.bf16 %v252_v25, %v251_v24  ;;  %v253_v30 = vld [vmem:[#allocation7 + $0x40] sm:$0xff]  ;;  %v254_v31 = vld [vmem:[#allocation7 + $0x48] sm:$0xff] }
  0x85   :  { %1112 = vmatpush3.bf16.msra.mxu0 %v1109_v5  ;;  %1142 = vmatprep.subr.bf16.mxu1 %v1141_v17  ;;  %v1125_v32 = vpack.c.bf16 %v156_v28, %v155_v27  ;;  %v157_v33 = vld [vmem:[#allocation5 + $0x60] sm:$0xff]  ;;  %v158_v34 = vld [vmem:[#allocation5 + $0x68] sm:$0xff]  ;;  %v1153_v35 = vpack.c.bf16 %v254_v31, %v253_v30  ;;  %v255_v36 = vld [vmem:[#allocation7 + $0x50] sm:$0xff] }
  0x86   :  { %1114 = vmatprep.subr.bf16.mxu0 %v1113_v8  ;;  %v256_v37 = vld [vmem:[#allocation7 + $0x58] sm:$0xff]  ;;  %v1129_v38 = vpack.c.bf16 %v158_v34, %v157_v33  ;;  %v159_v39 = vld [vmem:[#allocation5 + $0x70] sm:$0xff]  ;;  %v257_v42 = vld [vmem:[#allocation7 + $0x60] sm:$0xff] }
  0x87   :  { %v160_v40 = vld [vmem:[#allocation5 + $0x78] sm:$0xff]  ;;  %v1157_v41 = vpack.c.bf16 %v256_v37, %v255_v36  ;;  %v258_v43 = vld [vmem:[#allocation7 + $0x68] sm:$0xff]  ;;  %v259_v47 = vld [vmem:[#allocation7 + $0x70] sm:$0xff] }
  0x88   :  { %1144 = vmatpush3.bf16.msra.mxu1 %v1141_v17  ;;  %v1133_v44 = vpack.c.bf16 %v160_v40, %v159_v39  ;;  %v1161_v45 = vpack.c.bf16 %v258_v43, %v257_v42  ;;  %v144_v46 = vld [vmem:[#allocation2 + $0x8] sm:$0xff]  ;;  %v345_v50 = vld [vmem:[#allocation8] sm:$0xff]  ;;  %v346_v51 = vld [vmem:[#allocation8 + $0x8] sm:$0xff] }
  0x89   :  { %1116 = vmatpush3.bf16.msra.mxu0 %v1113_v8  ;;  %1146 = vmatprep.subr.bf16.mxu1 %v1145_v23  ;;  %v260_v48 = vld [vmem:[#allocation7 + $0x78] sm:$0xff]  ;;  %v347_v52 = vld [vmem:[#allocation8 + $0x10] sm:$0xff]  ;;  %v1169_v53 = vpack.c.bf16 %v346_v51, %v345_v50  ;;  %v349_v56 = vld [vmem:[#allocation8 + $0x20] sm:$0xff] }
  0x8a   :  { %1118 = vmatprep.subr.bf16.mxu0 %v1117_v20  ;;  %v1165_v49 = vpack.c.bf16 %v260_v48, %v259_v47  ;;  %v348_v54 = vld [vmem:[#allocation8 + $0x18] sm:$0xff]  ;;  %v350_v57 = vld [vmem:[#allocation8 + $0x28] sm:$0xff]  ;;  %v351_v59 = vld [vmem:[#allocation8 + $0x30] sm:$0xff] }
  0x8b   :  { %v1173_v55 = vpack.c.bf16 %v348_v54, %v347_v52  ;;  %v1177_v58 = vpack.c.bf16 %v350_v57, %v349_v56  ;;  %v352_v60 = vld [vmem:[#allocation8 + $0x38] sm:$0xff]  ;;  %v353_v62 = vld [vmem:[#allocation8 + $0x40] sm:$0xff]  ;;  %v354_v63 = vld [vmem:[#allocation8 + $0x48] sm:$0xff] }
  0x8c   :  { %1148 = vmatpush3.bf16.msra.mxu1 %v1145_v23  ;;  %v1181_v61 = vpack.c.bf16 %v352_v60, %v351_v59  ;;  %v1185_v0 = vpack.c.bf16 %v354_v63, %v353_v62  ;;  %v355_v1 = vld [vmem:[#allocation8 + $0x50] sm:$0xff]  ;;  %v356_v2 = vld [vmem:[#allocation8 + $0x58] sm:$0xff]  ;;  %v357_v4 = vld [vmem:[#allocation8 + $0x60] sm:$0xff] }
  0x8d   :  { %1120 = vmatpush3.bf16.msra.mxu0 %v1117_v20  ;;  %1150 = vmatprep.subr.bf16.mxu1 %v1149_v29  ;;  %v1189_v3 = vpack.c.bf16 %v356_v2, %v355_v1  ;;  %v358_v5 = vld [vmem:[#allocation8 + $0x68] sm:$0xff]  ;;  %v781_v7 = vld [vmem:[%s1780_s2] ss:$0 sm:$0xff]  ;;  %v360_v15 = vld [vmem:[#allocation8 + $0x78] sm:$0xff] }
  0x8e   :  { %1122 = vmatprep.subr.bf16.mxu0 %v1121_v26  ;;  %v1193_v6 = vpack.c.bf16 %v358_v5, %v357_v4  ;;  %v359_v14 = vld [vmem:[#allocation8 + $0x70] sm:$0xff]  ;;  %v445_v17 = vld [vmem:[#allocation10] sm:$0xff]  ;;  %v446_v18 = vld [vmem:[#allocation10 + $0x8] sm:$0xff] }
  0x8f   :  { %v1197_v16 = vpack.c.bf16 %v360_v15, %v359_v14  ;;  %v447_v19 = vld [vmem:[#allocation10 + $0x10] sm:$0xff]  ;;  %v1201_v20 = vpack.c.bf16 %v446_v18, %v445_v17  ;;  %v448_v21 = vld [vmem:[#allocation10 + $0x18] sm:$0xff]  ;;  %v449_v23 = vld [vmem:[#allocation10 + $0x20] sm:$0xff] }
  0x90   :  { %1152 = vmatpush3.bf16.msra.mxu1 %v1149_v29  ;;  %v1205_v22 = vpack.c.bf16 %v448_v21, %v447_v19  ;;  %v450_v24 = vld [vmem:[#allocation10 + $0x28] sm:$0xff]  ;;  %v452_v27 = vld [vmem:[#allocation10 + $0x38] sm:$0xff]  ;;  %v453_v29 = vld [vmem:[#allocation10 + $0x40] sm:$0xff] }
  0x91   :  { %1124 = vmatpush3.bf16.msra.mxu0 %v1121_v26  ;;  %1154 = vmatprep.subr.bf16.mxu1 %v1153_v35  ;;  %v1209_v25 = vpack.c.bf16 %v450_v24, %v449_v23  ;;  %v451_v26 = vld [vmem:[#allocation10 + $0x30] sm:$0xff]  ;;  %v454_v30 = vld [vmem:[#allocation10 + $0x48] sm:$0xff]  ;;  %v456_v33 = vld [vmem:[#allocation10 + $0x58] sm:$0xff] }
  0x92   :  { %1126 = vmatprep.subr.bf16.mxu0 %v1125_v32  ;;  %v1213_v28 = vpack.c.bf16 %v452_v27, %v451_v26  ;;  %v1217_v31 = vpack.c.bf16 %v454_v30, %v453_v29  ;;  %v458_v36 = vld [vmem:[#allocation10 + $0x68] sm:$0xff]  ;;  %v545_v48 = vld [vmem:[#allocation11] sm:$0xff]  ;;  %v547_v50 = vld [vmem:[#allocation11 + $0x10] sm:$0xff] }
  0x93   :  { %v548_v52 = vld [vmem:[#allocation11 + $0x18] sm:$0xff]  ;;  %v549_v54 = vld [vmem:[#allocation11 + $0x20] sm:$0xff]  ;;  %v551_v57 = vld [vmem:[#allocation11 + $0x30] sm:$0xff] }
  0x94   :  { %1156 = vmatpush3.bf16.msra.mxu1 %v1153_v35  ;;  %v457_v35 = vld [vmem:[#allocation10 + $0x60] sm:$0xff]  ;;  %v555_v63 = vld [vmem:[#allocation11 + $0x50] sm:$0xff]  ;;  %v646_v14 = vld [vmem:[#allocation13 + $0x8] sm:$0xff] }
  0x95   :  { %1128 = vmatpush3.bf16.msra.mxu0 %v1125_v32  ;;  %1158 = vmatprep.subr.bf16.mxu1 %v1157_v41  ;;  %v455_v32 = vld [vmem:[#allocation10 + $0x50] sm:$0xff]  ;;  %v1225_v37 = vpack.c.bf16 %v458_v36, %v457_v35  ;;  %v553_v60 = vld [vmem:[#allocation11 + $0x40] sm:$0xff]  ;;  %v648_v17 = vld [vmem:[#allocation13 + $0x18] sm:$0xff] }
  0x96   :  { %1130 = vmatprep.subr.bf16.mxu0 %v1129_v38  ;;  %v1221_v34 = vpack.c.bf16 %v456_v33, %v455_v32  ;;  %v557_v2 = vld [vmem:[#allocation11 + $0x60] sm:$0xff]  ;;  %v783_v5 = vld [vmem:[%s1784_s6] ss:$0 sm:$0xff]  ;;  %v652_v23 = vld [vmem:[#allocation13 + $0x38] sm:$0xff] }
  0x97   :  { %v647_v15 = vld [vmem:[#allocation13 + $0x10] sm:$0xff]  ;;  %v649_v19 = vld [vmem:[#allocation13 + $0x20] sm:$0xff]  ;;  %v654_v26 = vld [vmem:[#allocation13 + $0x48] sm:$0xff] }
  0x98   :  { %1160 = vmatpush3.bf16.msra.mxu1 %v1157_v41  ;;  %v1269_v18 = vpack.c.bf16 %v648_v17, %v647_v15  ;;  %v656_v29 = vld [vmem:[#allocation13 + $0x58] sm:$0xff]  ;;  %v658_v32 = vld [vmem:[#allocation13 + $0x68] sm:$0xff] }
  0x99   :  { %1132 = vmatpush3.bf16.msra.mxu0 %v1129_v38  ;;  %1162 = vmatprep.subr.bf16.mxu1 %v1161_v45  ;;  %v782_v38 = vld [vmem:[%s1782_s4] ss:$0 sm:$0xff] }
  0x9a   :  { %1134 = vmatprep.subr.bf16.mxu0 %v1133_v44 }
  0x9c   :  { %1164 = vmatpush3.bf16.msra.mxu1 %v1161_v45  ;;  %v459_v45 = vld [vmem:[#allocation10 + $0x70] sm:$0xff] }
  0x9d   :  { %1136 = vmatpush3.bf16.msra.mxu0 %v1133_v44  ;;  %1166 = vmatprep.subr.bf16.mxu1 %v1165_v49 }
  0x9e   :  { %1170 = vmatprep.subr.bf16.mxu0 %v1169_v53 }
  0xa0   :  { %928 = vmatmul.mubr.f32.vlgmr.msra.gmra.mrb[0].mxu0 %v144_v46  ;;  %1168 = vmatpush3.bf16.msra.mxu1 %v1165_v49  ;;  %v460_v46 = vld [vmem:[#allocation10 + $0x78] sm:$0xff]  ;;  %v546_v49 = vld [vmem:[#allocation11 + $0x8] sm:$0xff] }
  0xa1   :  { %1172 = vmatpush3.bf16.msra.mxu0 %v1169_v53  ;;  %1202 = vmatprep.subr.bf16.mxu1 %v1201_v20  ;;  %v1229_v47 = vpack.c.bf16 %v460_v46, %v459_v45  ;;  %v1233_v51 = vpack.c.bf16 %v546_v49, %v545_v48  ;;  %v1237_v53 = vpack.c.bf16 %v548_v52, %v547_v50 }
  0xa2   :  { %1174 = vmatprep.subr.bf16.mxu0 %v1173_v55 }
  0xa5   :  { %1176 = vmatpush3.bf16.msra.mxu0 %v1173_v55  ;;  %v550_v55 = vld [vmem:[#allocation11 + $0x28] sm:$0xff] }
  0xa6   :  { %1178 = vmatprep.subr.bf16.mxu0 %v1177_v58  ;;  %v1241_v56 = vpack.c.bf16 %v550_v55, %v549_v54 }
  0xa9   :  { %1180 = vmatpush3.bf16.msra.mxu0 %v1177_v58  ;;  %v552_v58 = vld [vmem:[#allocation11 + $0x38] sm:$0xff] }
  0xaa   :  { %1182 = vmatprep.subr.bf16.mxu0 %v1181_v61  ;;  %v1245_v59 = vpack.c.bf16 %v552_v58, %v551_v57 }
  0xad   :  { %1184 = vmatpush3.bf16.msra.mxu0 %v1181_v61  ;;  %v554_v61 = vld [vmem:[#allocation11 + $0x48] sm:$0xff] }
  0xae   :  { %1186 = vmatprep.subr.bf16.mxu0 %v1185_v0  ;;  %v1249_v62 = vpack.c.bf16 %v554_v61, %v553_v60 }
  0xb1   :  { %1188 = vmatpush3.bf16.msra.mxu0 %v1185_v0  ;;  %v556_v0 = vld [vmem:[#allocation11 + $0x58] sm:$0xff] }
  0xb2   :  { %1190 = vmatprep.subr.bf16.mxu0 %v1189_v3  ;;  %v1253_v1 = vpack.c.bf16 %v556_v0, %v555_v63 }
  0xb5   :  { %1192 = vmatpush3.bf16.msra.mxu0 %v1189_v3  ;;  %v558_v3 = vld [vmem:[#allocation11 + $0x68] sm:$0xff] }
  0xb6   :  { %1194 = vmatprep.subr.bf16.mxu0 %v1193_v6  ;;  %v1257_v4 = vpack.c.bf16 %v558_v3, %v557_v2 }
  0xb9   :  { %1196 = vmatpush3.bf16.msra.mxu0 %v1193_v6 }
  0xba   :  { %1198 = vmatprep.subr.bf16.mxu0 %v1197_v16 }
  0xbd   :  { %1200 = vmatpush3.bf16.msra.mxu0 %v1197_v16 }
  0xbe   :  { %1234 = vmatprep.subr.bf16.mxu0 %v1233_v51 }
 0x173   :  { %v929_v8 = vpop.f32.mrb[0].mxu0 }
 0x174   :  { %v240_v9 = vadd.f32 %v929_v8, %v781_v7  ;;  %v234_v10 = vpop.f32.mrb[1].mxu0 }
 0x175   :  { %v235_v11 = vadd.f32 %v781_v7, %v234_v10  ;;  %v559_v10 = vld [vmem:[#allocation11 + $0x70] sm:$0xff] }
 0x176   :  { %v244_v13 = vmax.f32 %v240_v9, 0.0 }
 0x177   :  { %v243_v12 = vmax.f32 %v235_v11, 0.0  ;;  %v560_v11 = vld [vmem:[#allocation11 + $0x78] sm:$0xff] }
 0x179   :  { %962 = vmatprep.mubr.f32.mxu1 %v243_v12  ;;  %v1261_v12 = vpack.c.bf16 %v560_v11, %v559_v10 }
 0x17a   :  { %963 = vmatmul.mubr.f32.vlgmr.msra.gmra.mrb[0].mxu1 %v244_v13  ;;  %v645_v13 = vld [vmem:[#allocation13] sm:$0xff] }
 0x17b   :  { %1204 = vmatpush3.bf16.msra.mxu1 %v1201_v20  ;;  %v1265_v16 = vpack.c.bf16 %v646_v14, %v645_v13  ;;  %v650_v20 = vld [vmem:[#allocation13 + $0x28] sm:$0xff] }
 0x17c   :  { %1206 = vmatprep.subr.bf16.mxu1 %v1205_v22  ;;  %v1273_v21 = vpack.c.bf16 %v650_v20, %v649_v19 }
 0x17f   :  { %1208 = vmatpush3.bf16.msra.mxu1 %v1205_v22  ;;  %v651_v22 = vld [vmem:[#allocation13 + $0x30] sm:$0xff] }
 0x180   :  { %1210 = vmatprep.subr.bf16.mxu1 %v1209_v25  ;;  %v1277_v24 = vpack.c.bf16 %v652_v23, %v651_v22 }
 0x183   :  { %1212 = vmatpush3.bf16.msra.mxu1 %v1209_v25  ;;  %v653_v25 = vld [vmem:[#allocation13 + $0x40] sm:$0xff] }
 0x184   :  { %1214 = vmatprep.subr.bf16.mxu1 %v1213_v28  ;;  %v1281_v27 = vpack.c.bf16 %v654_v26, %v653_v25 }
 0x187   :  { %1216 = vmatpush3.bf16.msra.mxu1 %v1213_v28  ;;  %v655_v28 = vld [vmem:[#allocation13 + $0x50] sm:$0xff] }
 0x188   :  { %1218 = vmatprep.subr.bf16.mxu1 %v1217_v31  ;;  %v1285_v30 = vpack.c.bf16 %v656_v29, %v655_v28 }
 0x18b   :  { %1220 = vmatpush3.bf16.msra.mxu1 %v1217_v31  ;;  %v657_v31 = vld [vmem:[#allocation13 + $0x60] sm:$0xff] }
 0x18c   :  { %1222 = vmatprep.subr.bf16.mxu1 %v1221_v34  ;;  %v1289_v33 = vpack.c.bf16 %v658_v32, %v657_v31 }
 0x18f   :  { %1224 = vmatpush3.bf16.msra.mxu1 %v1221_v34  ;;  %v784_v34 = vld [vmem:[%s1786_s8] ss:$0 sm:$0xff]  ;;  %s1527_s8 = smov [#allocation15]  }
 0x190   :  { %1226 = vmatprep.subr.bf16.mxu1 %v1225_v37  ;;  %s762_s3 = sshll.u32 %s1527_s8, 4  ;;  %s763_s3 = int_to_ptr.vmem [resolvable:$true] %s762_s3 }
 0x191   :  { %s1462_s20 = scalar_lea.vmem %s763_s3, 256  ;;  %p1467_p1 = scmp.lt.s32.totalorder %s763_s3, %s763_s3 }
 0x192   :  { %p1463_p0 = scmp.ne.s32.totalorder %s763_s3, %s1462_s20  ;;  %p1468_p2 = scmp.lt.s32.totalorder %s1462_s20, %s1462_s20 }
 0x193   :  { %1228 = vmatpush3.bf16.msra.mxu1 %v1225_v37 }
 0x194   :  { %1230 = vmatprep.subr.bf16.mxu1 %v1229_v47  ;;  %p1469_p3 = por %p1468_p2, %p1467_p1 }
 0x196   :  { %p1470_p4 = pnand %p1469_p3, %p1463_p0 }
 0x197   :  { %1232 = vmatpush3.bf16.msra.mxu1 %v1229_v47 }
 0x198   :  { %1266 = vmatprep.subr.bf16.mxu1 %v1265_v16 }
 0x24d   :  { %v964_v39 = vpop.f32.mrb[0].mxu1 }
 0x24e   :  { %v340_v40 = vadd.f32 %v964_v39, %v782_v38  ;;  %v334_v41 = vpop.f32.mrb[1].mxu1 }
 0x24f   :  { %v335_v42 = vadd.f32 %v782_v38, %v334_v41  ;;  %v659_v41 = vld [vmem:[#allocation13 + $0x70] sm:$0xff] }
 0x250   :  { %v344_v44 = vmax.f32 %v340_v40, 0.0 }
 0x251   :  { %v343_v43 = vmax.f32 %v335_v42, 0.0  ;;  %v660_v42 = vld [vmem:[#allocation13 + $0x78] sm:$0xff] }
 0x253   :  { %997 = vmatprep.mubr.f32.mxu0 %v343_v43  ;;  %v1293_v43 = vpack.c.bf16 %v660_v42, %v659_v41 }
 0x254   :  { %998 = vmatmul.mubr.f32.vlgmr.msra.gmra.mrb[2].mxu0 %v344_v44  ;;  %v785_v44 = vld [vmem:[%s1788_s10] ss:$0 sm:$0xff] }
 0x255   :  { %1236 = vmatpush3.bf16.msra.mxu0 %v1233_v51 }
 0x256   :  { %1238 = vmatprep.subr.bf16.mxu0 %v1237_v53 }
 0x259   :  { %1240 = vmatpush3.bf16.msra.mxu0 %v1237_v53 }
 0x25a   :  { %1242 = vmatprep.subr.bf16.mxu0 %v1241_v56 }
 0x25d   :  { %1244 = vmatpush3.bf16.msra.mxu0 %v1241_v56 }
 0x25e   :  { %1246 = vmatprep.subr.bf16.mxu0 %v1245_v59 }
 0x261   :  { %1248 = vmatpush3.bf16.msra.mxu0 %v1245_v59 }
 0x262   :  { %1250 = vmatprep.subr.bf16.mxu0 %v1249_v62 }
 0x265   :  { %1252 = vmatpush3.bf16.msra.mxu0 %v1249_v62 }
 0x266   :  { %1254 = vmatprep.subr.bf16.mxu0 %v1253_v1 }
 0x269   :  { %1256 = vmatpush3.bf16.msra.mxu0 %v1253_v1 }
 0x26a   :  { %1258 = vmatprep.subr.bf16.mxu0 %v1257_v4 }
 0x26d   :  { %1260 = vmatpush3.bf16.msra.mxu0 %v1257_v4 }
 0x26e   :  { %1262 = vmatprep.subr.bf16.mxu0 %v1261_v12 }
 0x271   :  { %1264 = vmatpush3.bf16.msra.mxu0 %v1261_v12 }
 0x327   :  { %v999_v6 = vpop.f32.mrb[2].mxu0 }
 0x328   :  { %v440_v7 = vadd.f32 %v999_v6, %v783_v5  ;;  %v434_v8 = vpop.f32.mrb[3].mxu0 }
 0x329   :  { %v435_v9 = vadd.f32 %v783_v5, %v434_v8 }
 0x32a   :  { %444 = vst [vmem:[#allocation15 + $0x8] sm:$0xff] %v440_v7 }
 0x32b   :  { %443 = vst [vmem:[#allocation15] sm:$0xff] %v435_v9  ;;  %1032 = vmatprep.mubr.f32.mxu1 %v435_v9 }
 0x32c   :  { %1033 = vmatmul.mubr.f32.vlgmr.msra.gmra.mrb[2].mxu1 %v440_v7 }
 0x32d   :  { %1268 = vmatpush3.bf16.msra.mxu1 %v1265_v16 }
 0x32e   :  { %1270 = vmatprep.subr.bf16.mxu1 %v1269_v18 }
 0x331   :  { %1272 = vmatpush3.bf16.msra.mxu1 %v1269_v18 }
 0x332   :  { %1274 = vmatprep.subr.bf16.mxu1 %v1273_v21 }
 0x335   :  { %1276 = vmatpush3.bf16.msra.mxu1 %v1273_v21 }
 0x336   :  { %1278 = vmatprep.subr.bf16.mxu1 %v1277_v24 }
 0x339   :  { %1280 = vmatpush3.bf16.msra.mxu1 %v1277_v24 }
 0x33a   :  { %1282 = vmatprep.subr.bf16.mxu1 %v1281_v27 }
 0x33d   :  { %1284 = vmatpush3.bf16.msra.mxu1 %v1281_v27 }
 0x33e   :  { %1286 = vmatprep.subr.bf16.mxu1 %v1285_v30 }
 0x341   :  { %1288 = vmatpush3.bf16.msra.mxu1 %v1285_v30 }
 0x342   :  { %1290 = vmatprep.subr.bf16.mxu1 %v1289_v33 }
 0x345   :  { %1292 = vmatpush3.bf16.msra.mxu1 %v1289_v33 }
 0x346   :  { %1294 = vmatprep.subr.bf16.mxu1 %v1293_v43 }
 0x349   :  { %1296 = vmatpush3.bf16.msra.mxu1 %v1293_v43 }
 0x3ff   :  { %v1034_v35 = vpop.f32.mrb[2].mxu1 }
 0x400   :  { %v540_v36 = vadd.f32 %v1034_v35, %v784_v34  ;;  %v534_v37 = vpop.f32.mrb[3].mxu1 }
 0x401   :  { %v535_v38 = vadd.f32 %v784_v34, %v534_v37 }
 0x402   :  { %v544_v40 = vmax.f32 %v540_v36, 0.0 }
 0x403   :  { %v543_v39 = vmax.f32 %v535_v38, 0.0 }
 0x405   :  { %1067 = vmatprep.mubr.f32.mxu0 %v543_v39 }
 0x406   :  { %1068 = vmatmul.mubr.f32.vlgmr.msra.gmra.mrb[4].mxu0 %v544_v40 }
 0x4d9   :  { %v1069_v45 = vpop.f32.mrb[4].mxu0 }
 0x4da   :  { %v640_v46 = vadd.f32 %v1069_v45, %v785_v44  ;;  %v634_v47 = vpop.f32.mrb[5].mxu0 }
 0x4db   :  { %v635_v48 = vadd.f32 %v785_v44, %v634_v47 }
 0x4dc   :  { %v644_v50 = vmax.f32 %v640_v46, 0.0 }
 0x4dd   :  { %v643_v49 = vmax.f32 %v635_v48, 0.0 }
 0x4df   :  { %1102 = vmatprep.mubr.f32.mxu1 %v643_v49 }
 0x4e0   :  { %1103 = vmatmul.mubr.f32.vlgmr.msra.gmra.mrb[4].mxu1 %v644_v50 }
 0x4e1   :  { %1473 = shalt.err (!%p1470_p4)
}
 0x4e2   :  { %s1474_s30 = scalar_lea.hbm %s1792_s14, 256 }
 0x4e3   :  { %p1475_p5 = scmp.ne.s32.totalorder %s1792_s14, %s1474_s30  ;;  %p1478_p6 = scmp.lt.u32.totalorder %s1474_s30, %s1792_s14 }
 0x4e5   :  { %p1480_p7 = pnand %p1478_p6, %p1475_p5 }
 0x4e7   :  { %1483 = shalt.err (!%p1480_p7)
}
 0x4e8   :  { %768 = dma.vmem_to_hbm [thread:$0]  %s763_s3, 256, %s1792_s14, [#allocation16], %s1520_s25, %s1520_s25, %s1521_s26  }
 0x4e9   :  { %v786_v51 = vld [vmem:[%s1790_s12] ss:$0 sm:$0xff]  ;;  %s1528_s7 = smov [#allocation14]  }
 0x4ea   :  { %s750_s5 = sshll.u32 %s1528_s7, 4  ;;  %s751_s5 = int_to_ptr.vmem [resolvable:$true] %s750_s5 }
 0x4eb   :  { %s1484_s11 = scalar_lea.vmem %s751_s5, 256  ;;  %p1489_p9 = scmp.lt.s32.totalorder %s751_s5, %s751_s5 }
 0x4ec   :  { %p1485_p8 = scmp.ne.s32.totalorder %s751_s5, %s1484_s11  ;;  %p1490_p10 = scmp.lt.s32.totalorder %s1484_s11, %s1484_s11 }
 0x4ee   :  { %p1491_p11 = por %p1490_p10, %p1489_p9 }
 0x4f0   :  { %p1492_p12 = pnand %p1491_p11, %p1485_p8 }
 0x5b3   :  { %v1104_v52 = vpop.f32.mrb[4].mxu1 }
 0x5b4   :  { %v740_v53 = vadd.f32 %v1104_v52, %v786_v51  ;;  %v734_v54 = vpop.f32.mrb[5].mxu1 }
 0x5b5   :  { %v735_v55 = vadd.f32 %v786_v51, %v734_v54 }
 0x5b6   :  { %744 = vst [vmem:[#allocation14 + $0x8] sm:$0xff] %v740_v53 }
 0x5b7   :  { %743 = vst [vmem:[#allocation14] sm:$0xff] %v735_v55 }
 0x5b8   :  { %1495 = shalt.err (!%p1492_p12)
}
 0x5b9   :  { %s1496_s12 = scalar_lea.hbm %s1791_s13, 256 }
 0x5ba   :  { %p1497_p13 = scmp.ne.s32.totalorder %s1791_s13, %s1496_s12  ;;  %p1500_p0 = scmp.lt.u32.totalorder %s1496_s12, %s1791_s13 }
 0x5bc   :  { %p1502_p1 = pnand %p1500_p0, %p1497_p13 }
 0x5be   :  { %1505 = shalt.err (!%p1502_p1)
}
 0x5bf   :  { %756 = dma.vmem_to_hbm [thread:$0]  %s751_s5, 256, %s1791_s13, [#allocation4], %s1520_s25, %s1520_s25, %s1521_s26  }
 0x5c0   :  { %1514 = dma.done.wait [#allocation4], 256  }
 0x5c1   :  { %1515 = vsyncadd [#allocation4], 4294967040 }
 0x5c2   :  { %1516 = dma.done.wait [#allocation16], 256  }
 0x5c3   :  { %1517 = vsyncadd [#allocation16], 4294967040 }
 0x5c4   :  { %775 = vsyncpa [#allocation3], 1 }
 0x5c5   :  { %776 = vsyncpa [#allocation6], 1 }
 0x5c6   :  { %777 = vsyncpa [#allocation9], 1 }
 0x5c7   :  { %778 = vsyncpa [#allocation12], 1 }
 0x5c8   :  { %779 = vsyncpa [#allocation4], 1 }
 0x5c9   :  { %780 = vsyncpa [#allocation16], 1 }

</bundles_post_ra>
